<compile_context>
chip_gen: v5e
topology: v5e:2x2
jax: 0.10.0
libtpu: 0.0.40
codegen_flags: <defaults>
</compile_context>

<pallas_src>
import math

import jax
import jax.numpy as jnp
from jax.experimental import pallas as pl
from jax.experimental.pallas import tpu as pltpu

MXU_DTYPE = jnp.bfloat16   # dtype of weights / activations fed to the MXU
SEQ_DTYPE = jnp.bfloat16   # dtype of x and inter-layer hidden sequences
ROW_PAD = 16               # pad batch rows to a multiple of this (bf16 sublane tile)


def _full_spec(shape):
    nd = len(shape)
    return pl.BlockSpec(shape, lambda *_: (0,) * nd)


def _sigmoid_via_tanh(z):
    # sigmoid(z) == 0.5 * tanh(0.5 * z) + 0.5  -> one EUP push instead of exp + recip.
    return 0.5 * jnp.tanh(0.5 * z) + 0.5


def _make_fused_kernel(num_layers, seq_len, batch_pad, hidden):
    """Kernel args: x, (w_ih, w_hh, b)*L, fc_w, fc_b, out, gx scratch, hseq scratch."""
    n_seq_scratch = min(2, num_layers - 1)   # last layer never writes its sequence
    unroll = True if seq_len <= 16 else 2    # short T: fully unroll the recurrence

    def kernel(*refs):
        x_ref = refs[0]                                     # (T*Bp, D_in) bf16
        lstm_refs = refs[1:1 + 3 * num_layers]              # (w_ih, w_hh, b) per layer
        fc_w_ref = refs[1 + 3 * num_layers]                 # (H, C) bf16
        fc_b_ref = refs[2 + 3 * num_layers]                 # (1, C) f32
        out_ref = refs[3 + 3 * num_layers]                  # (Bp, C) f32
        gx_ref = refs[4 + 3 * num_layers]                   # (T*Bp, 4H) f32 scratch
        hseq = list(refs[5 + 3 * num_layers:
                         5 + 3 * num_layers + n_seq_scratch])  # (T*Bp, H) bf16 scratch

        Bp = batch_pad
        H = hidden

        def run_layer(inp_ref, w_ih_ref, w_hh_ref, b_ref, out_seq_ref):
            # One big MXU matmul for the x-projection of ALL timesteps; bias folded in.
            gx_ref[...] = (
                jnp.dot(inp_ref[...], w_ih_ref[...],
                        preferred_element_type=jnp.float32)
                + b_ref[...])
            w_hh = w_hh_ref[...]                            # (H, 4H) bf16, hoisted

            def step(t, carry):
                h, c = carry                                # f32 (Bp, H)
                row = pl.multiple_of(t * Bp, Bp)            # tile-aligned row offset
                gates = jnp.dot(h.astype(w_hh.dtype), w_hh,
                                preferred_element_type=jnp.float32)
                gates = gates + gx_ref[pl.ds(row, Bp), :]
                # gate-column order is [i, f, o | g]
                sig = _sigmoid_via_tanh(gates[:, :3 * H])
                i_g = sig[:, 0 * H:1 * H]
                f_g = sig[:, 1 * H:2 * H]
                o_g = sig[:, 2 * H:3 * H]
                g_g = jnp.tanh(gates[:, 3 * H:4 * H])
                c_new = f_g * c + i_g * g_g
                h_new = o_g * jnp.tanh(c_new)
                if out_seq_ref is not None:                 # trace-time branch
                    out_seq_ref[pl.ds(row, Bp), :] = h_new.astype(out_seq_ref.dtype)
                return h_new, c_new

            init = (jnp.zeros((Bp, H), jnp.float32),
                    jnp.zeros((Bp, H), jnp.float32))
            h_last, _ = jax.lax.fori_loop(0, seq_len, step, init, unroll=unroll)
            return h_last

        h_last = None
        for layer in range(num_layers):
            inp_ref = x_ref if layer == 0 else hseq[(layer - 1) % 2]
            out_seq_ref = hseq[layer % 2] if layer < num_layers - 1 else None
            h_last = run_layer(inp_ref,
                               lstm_refs[3 * layer + 0],
                               lstm_refs[3 * layer + 1],
                               lstm_refs[3 * layer + 2],
                               out_seq_ref)
            # inter-layer dropout: eval-mode identity (see TODO in header)

        # Fused FC head on the last timestep's hidden state; single small store.
        logits = jnp.dot(h_last.astype(fc_w_ref.dtype), fc_w_ref[...],
                         preferred_element_type=jnp.float32) + fc_b_ref[...]
        out_ref[...] = logits.astype(out_ref.dtype)

    return kernel, n_seq_scratch


def model_rnn_handler_forward(x, params):
    """x: [B, T, input_size] (batch_first, like the PyTorch module). Eval-mode forward."""
    B, T, D_in = x.shape
    num_layers = len(params["lstm"])
    H = params["lstm"][0]["w_hh"].shape[0]
    C = params["fc"]["w"].shape[1]

    # Time-major, pad batch rows to a sublane-tile multiple, flatten (T, Bp) -> rows.
    Bp = ((B + ROW_PAD - 1) // ROW_PAD) * ROW_PAD
    x_tm = jnp.transpose(x, (1, 0, 2))
    x_tm = jnp.pad(x_tm, ((0, 0), (0, Bp - B), (0, 0)))
    x2d = x_tm.reshape(T * Bp, D_in).astype(SEQ_DTYPE)

    kernel, n_seq_scratch = _make_fused_kernel(num_layers, T, Bp, H)

    inputs = [x2d]
    in_specs = [_full_spec(x2d.shape)]
    for lp in params["lstm"]:
        inputs += [lp["w_ih"], lp["w_hh"], lp["b"]]
        in_specs += [_full_spec(lp["w_ih"].shape),
                     _full_spec(lp["w_hh"].shape),
                     _full_spec(lp["b"].shape)]
    inputs += [params["fc"]["w"], params["fc"]["b"]]
    in_specs += [_full_spec(params["fc"]["w"].shape),
                 _full_spec(params["fc"]["b"].shape)]

    scratch_shapes = ([pltpu.VMEM((T * Bp, 4 * H), jnp.float32)]
                      + [pltpu.VMEM((T * Bp, H), SEQ_DTYPE)] * n_seq_scratch)

    # VMEM budget: operands + scratch, x2 slack, floored at 16 MiB, capped at 64 MiB (v7x).
    def nbytes(shape, dtype):
        return math.prod(shape) * jnp.dtype(dtype).itemsize

    total = nbytes(x2d.shape, SEQ_DTYPE) + nbytes((Bp, C), jnp.float32)
    total += nbytes((T * Bp, 4 * H), jnp.float32)
    total += n_seq_scratch * nbytes((T * Bp, H), SEQ_DTYPE)
    for lp in params["lstm"]:
        total += (nbytes(lp["w_ih"].shape, lp["w_ih"].dtype)
                  + nbytes(lp["w_hh"].shape, lp["w_hh"].dtype)
                  + nbytes(lp["b"].shape, lp["b"].dtype))
    total += nbytes(params["fc"]["w"].shape, params["fc"]["w"].dtype)
    total += nbytes(params["fc"]["b"].shape, params["fc"]["b"].dtype)
    vmem_limit = int(min(64 << 20, max(16 << 20, 2 * total + (2 << 20))))

    out_pad = pl.pallas_call(
        kernel,
        out_shape=jax.ShapeDtypeStruct((Bp, C), jnp.float32),
        in_specs=in_specs,
        out_specs=_full_spec((Bp, C)),
        scratch_shapes=scratch_shapes,
        compiler_params=pltpu.CompilerParams(vmem_limit_bytes=vmem_limit),
    )(*inputs)
    return out_pad[:B]


def init_params(key, input_size, hidden_size, num_layers, num_classes):
    """PyTorch-style U(-1/sqrt(H), 1/sqrt(H)) init.

    Gate-column order is [i, f, o, g] (sigmoid gates contiguous).  When importing
    PyTorch weights, permute the 4H columns from torch's [i, f, g, o] order.
    """
    params = {"lstm": [], "fc": None}
    bound = float(1.0 / (hidden_size ** 0.5))
    H = hidden_size
    d_in = input_size
    for _ in range(num_layers):
        key, k1, k2, k3, k4 = jax.random.split(key, 5)
        w_ih = jax.random.uniform(k1, (d_in, 4 * H), jnp.float32, -bound, bound)
        w_hh = jax.random.uniform(k2, (H, 4 * H), jnp.float32, -bound, bound)
        b_ih = jax.random.uniform(k3, (4 * H,), jnp.float32, -bound, bound)
        b_hh = jax.random.uniform(k4, (4 * H,), jnp.float32, -bound, bound)
        params["lstm"].append({
            "w_ih": w_ih.astype(MXU_DTYPE),                 # (d_in, 4H) bf16
            "w_hh": w_hh.astype(MXU_DTYPE),                 # (H, 4H) bf16
            "b": (b_ih + b_hh).reshape(1, -1),              # (1, 4H) f32
        })
        d_in = H
    key, k5, k6 = jax.random.split(key, 3)
    w_fc = jax.random.uniform(k5, (H, num_classes), jnp.float32, -bound, bound)
    b_fc = jax.random.uniform(k6, (num_classes,), jnp.float32, -bound, bound)
    params["fc"] = {"w": w_fc.astype(MXU_DTYPE), "b": b_fc.reshape(1, -1)}
    return params


def _reference_forward(x, params):
    """Pure-JAX reference matching the kernel numerics (bf16 MXU operands, f32 math)."""
    hp = jax.lax.Precision.HIGHEST
    x_tm = jnp.transpose(x, (1, 0, 2)).astype(SEQ_DTYPE)
    T, B, _ = x_tm.shape
    H = params["lstm"][0]["w_hh"].shape[0]

    def sig(z):
        return 0.5 * jnp.tanh(0.5 * z) + 0.5

    seq = x_tm
    h = None
    for lp in params["lstm"]:
        w_ih = lp["w_ih"].astype(jnp.float32)
        w_hh = lp["w_hh"].astype(jnp.float32)
        gx = jnp.einsum("tbd,dg->tbg", seq.astype(jnp.float32), w_ih,
                        precision=hp) + lp["b"]
        h = jnp.zeros((B, H), jnp.float32)
        c = jnp.zeros((B, H), jnp.float32)
        outs = []
        for t in range(T):
            gates = jnp.dot(h.astype(MXU_DTYPE).astype(jnp.float32), w_hh,
                            precision=hp) + gx[t]
            i_g = sig(gates[:, 0 * H:1 * H])
            f_g = sig(gates[:, 1 * H:2 * H])
            o_g = sig(gates[:, 2 * H:3 * H])
            g_g = jnp.tanh(gates[:, 3 * H:4 * H])
            c = f_g * c + i_g * g_g
            h = o_g * jnp.tanh(c)
            outs.append(h.astype(SEQ_DTYPE))
        seq = jnp.stack(outs, axis=0)
    h_last = h.astype(MXU_DTYPE).astype(jnp.float32)
    return (jnp.dot(h_last, params["fc"]["w"].astype(jnp.float32), precision=hp)
            + params["fc"]["b"])


if __name__ == "__main__":
    # Small shapes consistent with the module's forward (batch_first LSTM).
    B, T = 2, 8
    input_size, hidden_size, num_layers, num_classes = 16, 32, 2, 4

    key = jax.random.PRNGKey(0)
    key, kx, kp = jax.random.split(key, 3)
    x = jax.random.normal(kx, (B, T, input_size), jnp.float32)
    params = init_params(kp, input_size, hidden_size, num_layers, num_classes)

    fwd = jax.jit(model_rnn_handler_forward)
    out = jax.block_until_ready(fwd(x, params))

    assert out.shape == (B, num_classes), out.shape
    assert bool(jnp.all(jnp.isfinite(out)))

    ref = _reference_forward(x, params)
    max_err = float(jnp.max(jnp.abs(out - ref)))
    assert jnp.allclose(out, ref, atol=2e-3, rtol=2e-3), (
        "max abs diff vs reference: %g" % max_err)

    print("KERNEL_OK")
</pallas_src>

<mosaic_0001>
module attributes {stable_mosaic.version = 11 : i64} {
  func.func @kernel(%arg0: memref<128x16xbf16, #tpu.memory_space<vmem>>, %arg1: memref<16x128xbf16, #tpu.memory_space<vmem>>, %arg2: memref<32x128xbf16, #tpu.memory_space<vmem>>, %arg3: memref<1x128xf32, #tpu.memory_space<vmem>>, %arg4: memref<32x128xbf16, #tpu.memory_space<vmem>>, %arg5: memref<32x128xbf16, #tpu.memory_space<vmem>>, %arg6: memref<1x128xf32, #tpu.memory_space<vmem>>, %arg7: memref<32x4xbf16, #tpu.memory_space<vmem>>, %arg8: memref<1x4xf32, #tpu.memory_space<vmem>>, %arg9: memref<16x4xf32, #tpu.memory_space<vmem>>, %arg10: memref<128x128xf32, #tpu.memory_space<vmem>>, %arg11: memref<128x32xbf16, #tpu.memory_space<vmem>>) attributes {dimension_semantics = [], scalar_prefetch = 0 : i64, scratch_operands = 2 : i64, tpu.core_type = #tpu.core_type<tc>} {
    %c0 = arith.constant 0 : index
    %c0_0 = arith.constant 0 : index
    %0 = vector.load %arg0[%c0, %c0_0] : memref<128x16xbf16, #tpu.memory_space<vmem>>, vector<128x16xbf16>
    %c0_1 = arith.constant 0 : index
    %c0_2 = arith.constant 0 : index
    %1 = vector.load %arg1[%c0_1, %c0_2] : memref<16x128xbf16, #tpu.memory_space<vmem>>, vector<16x128xbf16>
    %cst = arith.constant dense<0.000000e+00> : vector<128x128xf32>
    %2 = tpu.matmul %0, %1, %cst {dimension_numbers = #tpu.dot_dimension_numbers<[1], [0], [0], [1], [0, 0, 1, 1], [], []>} : vector<128x16xbf16>, vector<16x128xbf16>, vector<128x128xf32> -> vector<128x128xf32>
    %c0_3 = arith.constant 0 : index
    %c0_4 = arith.constant 0 : index
    %3 = vector.load %arg3[%c0_3, %c0_4] : memref<1x128xf32, #tpu.memory_space<vmem>>, vector<1x128xf32>
    %4 = vector.broadcast %3 : vector<1x128xf32> to vector<128x128xf32>
    %5 = arith.addf %2, %4 : vector<128x128xf32>
    %c0_5 = arith.constant 0 : index
    %c0_6 = arith.constant 0 : index
    %6 = vector.load %arg10[%c0_5, %c0_6] : memref<128x128xf32, #tpu.memory_space<vmem>>, vector<128x128xf32>
    tpu.vector_store %arg10[%c0_5, %c0_6], %5 {strides = array<i32>} : memref<128x128xf32, #tpu.memory_space<vmem>>, vector<128x128xf32>,
    %c0_7 = arith.constant 0 : index
    %c0_8 = arith.constant 0 : index
    %7 = vector.load %arg2[%c0_7, %c0_8] : memref<32x128xbf16, #tpu.memory_space<vmem>>, vector<32x128xbf16>
    %cst_9 = arith.constant 0.000000e+00 : f32
    %8 = vector.broadcast %cst_9 : f32 to vector<16x32xf32>
    %cst_10 = arith.constant 0.000000e+00 : f32
    %9 = vector.broadcast %cst_10 : f32 to vector<16x32xf32>
    %c0_i32 = arith.constant 0 : i32
    %c16_i32 = arith.constant 16 : i32
    %10 = arith.muli %c0_i32, %c16_i32 : i32
    %11 = tpu.assume_multiple %10, 16 : i32
    %12 = arith.truncf %8 : vector<16x32xf32> to vector<16x32xbf16>
    %cst_11 = arith.constant dense<0.000000e+00> : vector<16x128xf32>
    %13 = tpu.matmul %12, %7, %cst_11 {dimension_numbers = #tpu.dot_dimension_numbers<[1], [0], [0], [1], [0, 0, 1, 1], [], []>} : vector<16x32xbf16>, vector<32x128xbf16>, vector<16x128xf32> -> vector<16x128xf32>
    %14 = arith.index_cast %11 : i32 to index
    %c0_12 = arith.constant 0 : index
    %15 = vector.load %arg10[%14, %c0_12] : memref<128x128xf32, #tpu.memory_space<vmem>>, vector<16x128xf32>
    %16 = arith.addf %13, %15 : vector<16x128xf32>
    %17 = vector.extract_strided_slice %16 {offsets = [0, 0], sizes = [16, 96], strides = [1, 1]} : vector<16x128xf32> to vector<16x96xf32>
    %cst_13 = arith.constant 5.000000e-01 : f32
    %18 = vector.broadcast %cst_13 : f32 to vector<16x96xf32>
    %19 = arith.mulf %18, %17 : vector<16x96xf32>
    %20 = math.tanh %19 : vector<16x96xf32>
    %cst_14 = arith.constant 5.000000e-01 : f32
    %21 = vector.broadcast %cst_14 : f32 to vector<16x96xf32>
    %22 = arith.mulf %21, %20 : vector<16x96xf32>
    %cst_15 = arith.constant 5.000000e-01 : f32
    %23 = vector.broadcast %cst_15 : f32 to vector<16x96xf32>
    %24 = arith.addf %22, %23 : vector<16x96xf32>
    %25 = vector.extract_strided_slice %24 {offsets = [0, 0], sizes = [16, 32], strides = [1, 1]} : vector<16x96xf32> to vector<16x32xf32>
    %26 = vector.extract_strided_slice %24 {offsets = [0, 32], sizes = [16, 32], strides = [1, 1]} : vector<16x96xf32> to vector<16x32xf32>
    %27 = vector.extract_strided_slice %24 {offsets = [0, 64], sizes = [16, 32], strides = [1, 1]} : vector<16x96xf32> to vector<16x32xf32>
    %28 = vector.extract_strided_slice %16 {offsets = [0, 96], sizes = [16, 32], strides = [1, 1]} : vector<16x128xf32> to vector<16x32xf32>
    %29 = math.tanh %28 : vector<16x32xf32>
    %30 = arith.mulf %26, %9 : vector<16x32xf32>
    %31 = arith.mulf %25, %29 : vector<16x32xf32>
    %32 = arith.addf %30, %31 : vector<16x32xf32>
    %33 = math.tanh %32 : vector<16x32xf32>
    %34 = arith.mulf %27, %33 : vector<16x32xf32>
    %35 = arith.truncf %34 : vector<16x32xf32> to vector<16x32xbf16>
    %36 = arith.index_cast %11 : i32 to index
    %c0_16 = arith.constant 0 : index
    %37 = vector.load %arg11[%36, %c0_16] : memref<128x32xbf16, #tpu.memory_space<vmem>>, vector<16x32xbf16>
    tpu.vector_store %arg11[%36, %c0_16], %35 {strides = array<i32>} : memref<128x32xbf16, #tpu.memory_space<vmem>>, vector<16x32xbf16>,
    %c1_i32 = arith.constant 1 : i32
    %c16_i32_17 = arith.constant 16 : i32
    %38 = arith.muli %c1_i32, %c16_i32_17 : i32
    %39 = tpu.assume_multiple %38, 16 : i32
    %40 = arith.truncf %34 : vector<16x32xf32> to vector<16x32xbf16>
    %cst_18 = arith.constant dense<0.000000e+00> : vector<16x128xf32>
    %41 = tpu.matmul %40, %7, %cst_18 {dimension_numbers = #tpu.dot_dimension_numbers<[1], [0], [0], [1], [0, 0, 1, 1], [], []>} : vector<16x32xbf16>, vector<32x128xbf16>, vector<16x128xf32> -> vector<16x128xf32>
    %42 = arith.index_cast %39 : i32 to index
    %c0_19 = arith.constant 0 : index
    %43 = vector.load %arg10[%42, %c0_19] : memref<128x128xf32, #tpu.memory_space<vmem>>, vector<16x128xf32>
    %44 = arith.addf %41, %43 : vector<16x128xf32>
    %45 = vector.extract_strided_slice %44 {offsets = [0, 0], sizes = [16, 96], strides = [1, 1]} : vector<16x128xf32> to vector<16x96xf32>
    %cst_20 = arith.constant 5.000000e-01 : f32
    %46 = vector.broadcast %cst_20 : f32 to vector<16x96xf32>
    %47 = arith.mulf %46, %45 : vector<16x96xf32>
    %48 = math.tanh %47 : vector<16x96xf32>
    %cst_21 = arith.constant 5.000000e-01 : f32
    %49 = vector.broadcast %cst_21 : f32 to vector<16x96xf32>
    %50 = arith.mulf %49, %48 : vector<16x96xf32>
    %cst_22 = arith.constant 5.000000e-01 : f32
    %51 = vector.broadcast %cst_22 : f32 to vector<16x96xf32>
    %52 = arith.addf %50, %51 : vector<16x96xf32>
    %53 = vector.extract_strided_slice %52 {offsets = [0, 0], sizes = [16, 32], strides = [1, 1]} : vector<16x96xf32> to vector<16x32xf32>
    %54 = vector.extract_strided_slice %52 {offsets = [0, 32], sizes = [16, 32], strides = [1, 1]} : vector<16x96xf32> to vector<16x32xf32>
    %55 = vector.extract_strided_slice %52 {offsets = [0, 64], sizes = [16, 32], strides = [1, 1]} : vector<16x96xf32> to vector<16x32xf32>
    %56 = vector.extract_strided_slice %44 {offsets = [0, 96], sizes = [16, 32], strides = [1, 1]} : vector<16x128xf32> to vector<16x32xf32>
    %57 = math.tanh %56 : vector<16x32xf32>
    %58 = arith.mulf %54, %32 : vector<16x32xf32>
    %59 = arith.mulf %53, %57 : vector<16x32xf32>
    %60 = arith.addf %58, %59 : vector<16x32xf32>
    %61 = math.tanh %60 : vector<16x32xf32>
    %62 = arith.mulf %55, %61 : vector<16x32xf32>
    %63 = arith.truncf %62 : vector<16x32xf32> to vector<16x32xbf16>
    %64 = arith.index_cast %39 : i32 to index
    %c0_23 = arith.constant 0 : index
    %65 = vector.load %arg11[%64, %c0_23] : memref<128x32xbf16, #tpu.memory_space<vmem>>, vector<16x32xbf16>
    tpu.vector_store %arg11[%64, %c0_23], %63 {strides = array<i32>} : memref<128x32xbf16, #tpu.memory_space<vmem>>, vector<16x32xbf16>,
    %c2_i32 = arith.constant 2 : i32
    %c16_i32_24 = arith.constant 16 : i32
    %66 = arith.muli %c2_i32, %c16_i32_24 : i32
    %67 = tpu.assume_multiple %66, 16 : i32
    %68 = arith.truncf %62 : vector<16x32xf32> to vector<16x32xbf16>
    %cst_25 = arith.constant dense<0.000000e+00> : vector<16x128xf32>
    %69 = tpu.matmul %68, %7, %cst_25 {dimension_numbers = #tpu.dot_dimension_numbers<[1], [0], [0], [1], [0, 0, 1, 1], [], []>} : vector<16x32xbf16>, vector<32x128xbf16>, vector<16x128xf32> -> vector<16x128xf32>
    %70 = arith.index_cast %67 : i32 to index
    %c0_26 = arith.constant 0 : index
    %71 = vector.load %arg10[%70, %c0_26] : memref<128x128xf32, #tpu.memory_space<vmem>>, vector<16x128xf32>
    %72 = arith.addf %69, %71 : vector<16x128xf32>
    %73 = vector.extract_strided_slice %72 {offsets = [0, 0], sizes = [16, 96], strides = [1, 1]} : vector<16x128xf32> to vector<16x96xf32>
    %cst_27 = arith.constant 5.000000e-01 : f32
    %74 = vector.broadcast %cst_27 : f32 to vector<16x96xf32>
    %75 = arith.mulf %74, %73 : vector<16x96xf32>
    %76 = math.tanh %75 : vector<16x96xf32>
    %cst_28 = arith.constant 5.000000e-01 : f32
    %77 = vector.broadcast %cst_28 : f32 to vector<16x96xf32>
    %78 = arith.mulf %77, %76 : vector<16x96xf32>
    %cst_29 = arith.constant 5.000000e-01 : f32
    %79 = vector.broadcast %cst_29 : f32 to vector<16x96xf32>
    %80 = arith.addf %78, %79 : vector<16x96xf32>
    %81 = vector.extract_strided_slice %80 {offsets = [0, 0], sizes = [16, 32], strides = [1, 1]} : vector<16x96xf32> to vector<16x32xf32>
    %82 = vector.extract_strided_slice %80 {offsets = [0, 32], sizes = [16, 32], strides = [1, 1]} : vector<16x96xf32> to vector<16x32xf32>
    %83 = vector.extract_strided_slice %80 {offsets = [0, 64], sizes = [16, 32], strides = [1, 1]} : vector<16x96xf32> to vector<16x32xf32>
    %84 = vector.extract_strided_slice %72 {offsets = [0, 96], sizes = [16, 32], strides = [1, 1]} : vector<16x128xf32> to vector<16x32xf32>
    %85 = math.tanh %84 : vector<16x32xf32>
    %86 = arith.mulf %82, %60 : vector<16x32xf32>
    %87 = arith.mulf %81, %85 : vector<16x32xf32>
    %88 = arith.addf %86, %87 : vector<16x32xf32>
    %89 = math.tanh %88 : vector<16x32xf32>
    %90 = arith.mulf %83, %89 : vector<16x32xf32>
    %91 = arith.truncf %90 : vector<16x32xf32> to vector<16x32xbf16>
    %92 = arith.index_cast %67 : i32 to index
    %c0_30 = arith.constant 0 : index
    %93 = vector.load %arg11[%92, %c0_30] : memref<128x32xbf16, #tpu.memory_space<vmem>>, vector<16x32xbf16>
    tpu.vector_store %arg11[%92, %c0_30], %91 {strides = array<i32>} : memref<128x32xbf16, #tpu.memory_space<vmem>>, vector<16x32xbf16>,
    %c3_i32 = arith.constant 3 : i32
    %c16_i32_31 = arith.constant 16 : i32
    %94 = arith.muli %c3_i32, %c16_i32_31 : i32
    %95 = tpu.assume_multiple %94, 16 : i32
    %96 = arith.truncf %90 : vector<16x32xf32> to vector<16x32xbf16>
    %cst_32 = arith.constant dense<0.000000e+00> : vector<16x128xf32>
    %97 = tpu.matmul %96, %7, %cst_32 {dimension_numbers = #tpu.dot_dimension_numbers<[1], [0], [0], [1], [0, 0, 1, 1], [], []>} : vector<16x32xbf16>, vector<32x128xbf16>, vector<16x128xf32> -> vector<16x128xf32>
    %98 = arith.index_cast %95 : i32 to index
    %c0_33 = arith.constant 0 : index
    %99 = vector.load %arg10[%98, %c0_33] : memref<128x128xf32, #tpu.memory_space<vmem>>, vector<16x128xf32>
    %100 = arith.addf %97, %99 : vector<16x128xf32>
    %101 = vector.extract_strided_slice %100 {offsets = [0, 0], sizes = [16, 96], strides = [1, 1]} : vector<16x128xf32> to vector<16x96xf32>
    %cst_34 = arith.constant 5.000000e-01 : f32
    %102 = vector.broadcast %cst_34 : f32 to vector<16x96xf32>
    %103 = arith.mulf %102, %101 : vector<16x96xf32>
    %104 = math.tanh %103 : vector<16x96xf32>
    %cst_35 = arith.constant 5.000000e-01 : f32
    %105 = vector.broadcast %cst_35 : f32 to vector<16x96xf32>
    %106 = arith.mulf %105, %104 : vector<16x96xf32>
    %cst_36 = arith.constant 5.000000e-01 : f32
    %107 = vector.broadcast %cst_36 : f32 to vector<16x96xf32>
    %108 = arith.addf %106, %107 : vector<16x96xf32>
    %109 = vector.extract_strided_slice %108 {offsets = [0, 0], sizes = [16, 32], strides = [1, 1]} : vector<16x96xf32> to vector<16x32xf32>
    %110 = vector.extract_strided_slice %108 {offsets = [0, 32], sizes = [16, 32], strides = [1, 1]} : vector<16x96xf32> to vector<16x32xf32>
    %111 = vector.extract_strided_slice %108 {offsets = [0, 64], sizes = [16, 32], strides = [1, 1]} : vector<16x96xf32> to vector<16x32xf32>
    %112 = vector.extract_strided_slice %100 {offsets = [0, 96], sizes = [16, 32], strides = [1, 1]} : vector<16x128xf32> to vector<16x32xf32>
    %113 = math.tanh %112 : vector<16x32xf32>
    %114 = arith.mulf %110, %88 : vector<16x32xf32>
    %115 = arith.mulf %109, %113 : vector<16x32xf32>
    %116 = arith.addf %114, %115 : vector<16x32xf32>
    %117 = math.tanh %116 : vector<16x32xf32>
    %118 = arith.mulf %111, %117 : vector<16x32xf32>
    %119 = arith.truncf %118 : vector<16x32xf32> to vector<16x32xbf16>
    %120 = arith.index_cast %95 : i32 to index
    %c0_37 = arith.constant 0 : index
    %121 = vector.load %arg11[%120, %c0_37] : memref<128x32xbf16, #tpu.memory_space<vmem>>, vector<16x32xbf16>
    tpu.vector_store %arg11[%120, %c0_37], %119 {strides = array<i32>} : memref<128x32xbf16, #tpu.memory_space<vmem>>, vector<16x32xbf16>,
    %c4_i32 = arith.constant 4 : i32
    %c16_i32_38 = arith.constant 16 : i32
    %122 = arith.muli %c4_i32, %c16_i32_38 : i32
    %123 = tpu.assume_multiple %122, 16 : i32
    %124 = arith.truncf %118 : vector<16x32xf32> to vector<16x32xbf16>
    %cst_39 = arith.constant dense<0.000000e+00> : vector<16x128xf32>
    %125 = tpu.matmul %124, %7, %cst_39 {dimension_numbers = #tpu.dot_dimension_numbers<[1], [0], [0], [1], [0, 0, 1, 1], [], []>} : vector<16x32xbf16>, vector<32x128xbf16>, vector<16x128xf32> -> vector<16x128xf32>
    %126 = arith.index_cast %123 : i32 to index
    %c0_40 = arith.constant 0 : index
    %127 = vector.load %arg10[%126, %c0_40] : memref<128x128xf32, #tpu.memory_space<vmem>>, vector<16x128xf32>
    %128 = arith.addf %125, %127 : vector<16x128xf32>
    %129 = vector.extract_strided_slice %128 {offsets = [0, 0], sizes = [16, 96], strides = [1, 1]} : vector<16x128xf32> to vector<16x96xf32>
    %cst_41 = arith.constant 5.000000e-01 : f32
    %130 = vector.broadcast %cst_41 : f32 to vector<16x96xf32>
    %131 = arith.mulf %130, %129 : vector<16x96xf32>
    %132 = math.tanh %131 : vector<16x96xf32>
    %cst_42 = arith.constant 5.000000e-01 : f32
    %133 = vector.broadcast %cst_42 : f32 to vector<16x96xf32>
    %134 = arith.mulf %133, %132 : vector<16x96xf32>
    %cst_43 = arith.constant 5.000000e-01 : f32
    %135 = vector.broadcast %cst_43 : f32 to vector<16x96xf32>
    %136 = arith.addf %134, %135 : vector<16x96xf32>
    %137 = vector.extract_strided_slice %136 {offsets = [0, 0], sizes = [16, 32], strides = [1, 1]} : vector<16x96xf32> to vector<16x32xf32>
    %138 = vector.extract_strided_slice %136 {offsets = [0, 32], sizes = [16, 32], strides = [1, 1]} : vector<16x96xf32> to vector<16x32xf32>
    %139 = vector.extract_strided_slice %136 {offsets = [0, 64], sizes = [16, 32], strides = [1, 1]} : vector<16x96xf32> to vector<16x32xf32>
    %140 = vector.extract_strided_slice %128 {offsets = [0, 96], sizes = [16, 32], strides = [1, 1]} : vector<16x128xf32> to vector<16x32xf32>
    %141 = math.tanh %140 : vector<16x32xf32>
    %142 = arith.mulf %138, %116 : vector<16x32xf32>
    %143 = arith.mulf %137, %141 : vector<16x32xf32>
    %144 = arith.addf %142, %143 : vector<16x32xf32>
    %145 = math.tanh %144 : vector<16x32xf32>
    %146 = arith.mulf %139, %145 : vector<16x32xf32>
    %147 = arith.truncf %146 : vector<16x32xf32> to vector<16x32xbf16>
    %148 = arith.index_cast %123 : i32 to index
    %c0_44 = arith.constant 0 : index
    %149 = vector.load %arg11[%148, %c0_44] : memref<128x32xbf16, #tpu.memory_space<vmem>>, vector<16x32xbf16>
    tpu.vector_store %arg11[%148, %c0_44], %147 {strides = array<i32>} : memref<128x32xbf16, #tpu.memory_space<vmem>>, vector<16x32xbf16>,
    %c5_i32 = arith.constant 5 : i32
    %c16_i32_45 = arith.constant 16 : i32
    %150 = arith.muli %c5_i32, %c16_i32_45 : i32
    %151 = tpu.assume_multiple %150, 16 : i32
    %152 = arith.truncf %146 : vector<16x32xf32> to vector<16x32xbf16>
    %cst_46 = arith.constant dense<0.000000e+00> : vector<16x128xf32>
    %153 = tpu.matmul %152, %7, %cst_46 {dimension_numbers = #tpu.dot_dimension_numbers<[1], [0], [0], [1], [0, 0, 1, 1], [], []>} : vector<16x32xbf16>, vector<32x128xbf16>, vector<16x128xf32> -> vector<16x128xf32>
    %154 = arith.index_cast %151 : i32 to index
    %c0_47 = arith.constant 0 : index
    %155 = vector.load %arg10[%154, %c0_47] : memref<128x128xf32, #tpu.memory_space<vmem>>, vector<16x128xf32>
    %156 = arith.addf %153, %155 : vector<16x128xf32>
    %157 = vector.extract_strided_slice %156 {offsets = [0, 0], sizes = [16, 96], strides = [1, 1]} : vector<16x128xf32> to vector<16x96xf32>
    %cst_48 = arith.constant 5.000000e-01 : f32
    %158 = vector.broadcast %cst_48 : f32 to vector<16x96xf32>
    %159 = arith.mulf %158, %157 : vector<16x96xf32>
    %160 = math.tanh %159 : vector<16x96xf32>
    %cst_49 = arith.constant 5.000000e-01 : f32
    %161 = vector.broadcast %cst_49 : f32 to vector<16x96xf32>
    %162 = arith.mulf %161, %160 : vector<16x96xf32>
    %cst_50 = arith.constant 5.000000e-01 : f32
    %163 = vector.broadcast %cst_50 : f32 to vector<16x96xf32>
    %164 = arith.addf %162, %163 : vector<16x96xf32>
    %165 = vector.extract_strided_slice %164 {offsets = [0, 0], sizes = [16, 32], strides = [1, 1]} : vector<16x96xf32> to vector<16x32xf32>
    %166 = vector.extract_strided_slice %164 {offsets = [0, 32], sizes = [16, 32], strides = [1, 1]} : vector<16x96xf32> to vector<16x32xf32>
    %167 = vector.extract_strided_slice %164 {offsets = [0, 64], sizes = [16, 32], strides = [1, 1]} : vector<16x96xf32> to vector<16x32xf32>
    %168 = vector.extract_strided_slice %156 {offsets = [0, 96], sizes = [16, 32], strides = [1, 1]} : vector<16x128xf32> to vector<16x32xf32>
    %169 = math.tanh %168 : vector<16x32xf32>
    %170 = arith.mulf %166, %144 : vector<16x32xf32>
    %171 = arith.mulf %165, %169 : vector<16x32xf32>
    %172 = arith.addf %170, %171 : vector<16x32xf32>
    %173 = math.tanh %172 : vector<16x32xf32>
    %174 = arith.mulf %167, %173 : vector<16x32xf32>
    %175 = arith.truncf %174 : vector<16x32xf32> to vector<16x32xbf16>
    %176 = arith.index_cast %151 : i32 to index
    %c0_51 = arith.constant 0 : index
    %177 = vector.load %arg11[%176, %c0_51] : memref<128x32xbf16, #tpu.memory_space<vmem>>, vector<16x32xbf16>
    tpu.vector_store %arg11[%176, %c0_51], %175 {strides = array<i32>} : memref<128x32xbf16, #tpu.memory_space<vmem>>, vector<16x32xbf16>,
    %c6_i32 = arith.constant 6 : i32
    %c16_i32_52 = arith.constant 16 : i32
    %178 = arith.muli %c6_i32, %c16_i32_52 : i32
    %179 = tpu.assume_multiple %178, 16 : i32
    %180 = arith.truncf %174 : vector<16x32xf32> to vector<16x32xbf16>
    %cst_53 = arith.constant dense<0.000000e+00> : vector<16x128xf32>
    %181 = tpu.matmul %180, %7, %cst_53 {dimension_numbers = #tpu.dot_dimension_numbers<[1], [0], [0], [1], [0, 0, 1, 1], [], []>} : vector<16x32xbf16>, vector<32x128xbf16>, vector<16x128xf32> -> vector<16x128xf32>
    %182 = arith.index_cast %179 : i32 to index
    %c0_54 = arith.constant 0 : index
    %183 = vector.load %arg10[%182, %c0_54] : memref<128x128xf32, #tpu.memory_space<vmem>>, vector<16x128xf32>
    %184 = arith.addf %181, %183 : vector<16x128xf32>
    %185 = vector.extract_strided_slice %184 {offsets = [0, 0], sizes = [16, 96], strides = [1, 1]} : vector<16x128xf32> to vector<16x96xf32>
    %cst_55 = arith.constant 5.000000e-01 : f32
    %186 = vector.broadcast %cst_55 : f32 to vector<16x96xf32>
    %187 = arith.mulf %186, %185 : vector<16x96xf32>
    %188 = math.tanh %187 : vector<16x96xf32>
    %cst_56 = arith.constant 5.000000e-01 : f32
    %189 = vector.broadcast %cst_56 : f32 to vector<16x96xf32>
    %190 = arith.mulf %189, %188 : vector<16x96xf32>
    %cst_57 = arith.constant 5.000000e-01 : f32
    %191 = vector.broadcast %cst_57 : f32 to vector<16x96xf32>
    %192 = arith.addf %190, %191 : vector<16x96xf32>
    %193 = vector.extract_strided_slice %192 {offsets = [0, 0], sizes = [16, 32], strides = [1, 1]} : vector<16x96xf32> to vector<16x32xf32>
    %194 = vector.extract_strided_slice %192 {offsets = [0, 32], sizes = [16, 32], strides = [1, 1]} : vector<16x96xf32> to vector<16x32xf32>
    %195 = vector.extract_strided_slice %192 {offsets = [0, 64], sizes = [16, 32], strides = [1, 1]} : vector<16x96xf32> to vector<16x32xf32>
    %196 = vector.extract_strided_slice %184 {offsets = [0, 96], sizes = [16, 32], strides = [1, 1]} : vector<16x128xf32> to vector<16x32xf32>
    %197 = math.tanh %196 : vector<16x32xf32>
    %198 = arith.mulf %194, %172 : vector<16x32xf32>
    %199 = arith.mulf %193, %197 : vector<16x32xf32>
    %200 = arith.addf %198, %199 : vector<16x32xf32>
    %201 = math.tanh %200 : vector<16x32xf32>
    %202 = arith.mulf %195, %201 : vector<16x32xf32>
    %203 = arith.truncf %202 : vector<16x32xf32> to vector<16x32xbf16>
    %204 = arith.index_cast %179 : i32 to index
    %c0_58 = arith.constant 0 : index
    %205 = vector.load %arg11[%204, %c0_58] : memref<128x32xbf16, #tpu.memory_space<vmem>>, vector<16x32xbf16>
    tpu.vector_store %arg11[%204, %c0_58], %203 {strides = array<i32>} : memref<128x32xbf16, #tpu.memory_space<vmem>>, vector<16x32xbf16>,
    %c7_i32 = arith.constant 7 : i32
    %c16_i32_59 = arith.constant 16 : i32
    %206 = arith.muli %c7_i32, %c16_i32_59 : i32
    %207 = tpu.assume_multiple %206, 16 : i32
    %208 = arith.truncf %202 : vector<16x32xf32> to vector<16x32xbf16>
    %cst_60 = arith.constant dense<0.000000e+00> : vector<16x128xf32>
    %209 = tpu.matmul %208, %7, %cst_60 {dimension_numbers = #tpu.dot_dimension_numbers<[1], [0], [0], [1], [0, 0, 1, 1], [], []>} : vector<16x32xbf16>, vector<32x128xbf16>, vector<16x128xf32> -> vector<16x128xf32>
    %210 = arith.index_cast %207 : i32 to index
    %c0_61 = arith.constant 0 : index
    %211 = vector.load %arg10[%210, %c0_61] : memref<128x128xf32, #tpu.memory_space<vmem>>, vector<16x128xf32>
    %212 = arith.addf %209, %211 : vector<16x128xf32>
    %213 = vector.extract_strided_slice %212 {offsets = [0, 0], sizes = [16, 96], strides = [1, 1]} : vector<16x128xf32> to vector<16x96xf32>
    %cst_62 = arith.constant 5.000000e-01 : f32
    %214 = vector.broadcast %cst_62 : f32 to vector<16x96xf32>
    %215 = arith.mulf %214, %213 : vector<16x96xf32>
    %216 = math.tanh %215 : vector<16x96xf32>
    %cst_63 = arith.constant 5.000000e-01 : f32
    %217 = vector.broadcast %cst_63 : f32 to vector<16x96xf32>
    %218 = arith.mulf %217, %216 : vector<16x96xf32>
    %cst_64 = arith.constant 5.000000e-01 : f32
    %219 = vector.broadcast %cst_64 : f32 to vector<16x96xf32>
    %220 = arith.addf %218, %219 : vector<16x96xf32>
    %221 = vector.extract_strided_slice %220 {offsets = [0, 0], sizes = [16, 32], strides = [1, 1]} : vector<16x96xf32> to vector<16x32xf32>
    %222 = vector.extract_strided_slice %220 {offsets = [0, 32], sizes = [16, 32], strides = [1, 1]} : vector<16x96xf32> to vector<16x32xf32>
    %223 = vector.extract_strided_slice %220 {offsets = [0, 64], sizes = [16, 32], strides = [1, 1]} : vector<16x96xf32> to vector<16x32xf32>
    %224 = vector.extract_strided_slice %212 {offsets = [0, 96], sizes = [16, 32], strides = [1, 1]} : vector<16x128xf32> to vector<16x32xf32>
    %225 = math.tanh %224 : vector<16x32xf32>
    %226 = arith.mulf %222, %200 : vector<16x32xf32>
    %227 = arith.mulf %221, %225 : vector<16x32xf32>
    %228 = arith.addf %226, %227 : vector<16x32xf32>
    %229 = math.tanh %228 : vector<16x32xf32>
    %230 = arith.mulf %223, %229 : vector<16x32xf32>
    %231 = arith.truncf %230 : vector<16x32xf32> to vector<16x32xbf16>
    %232 = arith.index_cast %207 : i32 to index
    %c0_65 = arith.constant 0 : index
    %233 = vector.load %arg11[%232, %c0_65] : memref<128x32xbf16, #tpu.memory_space<vmem>>, vector<16x32xbf16>
    tpu.vector_store %arg11[%232, %c0_65], %231 {strides = array<i32>} : memref<128x32xbf16, #tpu.memory_space<vmem>>, vector<16x32xbf16>,
    %c8_i32 = arith.constant 8 : i32
    %c0_66 = arith.constant 0 : index
    %c0_67 = arith.constant 0 : index
    %234 = vector.load %arg11[%c0_66, %c0_67] : memref<128x32xbf16, #tpu.memory_space<vmem>>, vector<128x32xbf16>
    %c0_68 = arith.constant 0 : index
    %c0_69 = arith.constant 0 : index
    %235 = vector.load %arg4[%c0_68, %c0_69] : memref<32x128xbf16, #tpu.memory_space<vmem>>, vector<32x128xbf16>
    %cst_70 = arith.constant dense<0.000000e+00> : vector<128x128xf32>
    %236 = tpu.matmul %234, %235, %cst_70 {dimension_numbers = #tpu.dot_dimension_numbers<[1], [0], [0], [1], [0, 0, 1, 1], [], []>} : vector<128x32xbf16>, vector<32x128xbf16>, vector<128x128xf32> -> vector<128x128xf32>
    %c0_71 = arith.constant 0 : index
    %c0_72 = arith.constant 0 : index
    %237 = vector.load %arg6[%c0_71, %c0_72] : memref<1x128xf32, #tpu.memory_space<vmem>>, vector<1x128xf32>
    %238 = vector.broadcast %237 : vector<1x128xf32> to vector<128x128xf32>
    %239 = arith.addf %236, %238 : vector<128x128xf32>
    %c0_73 = arith.constant 0 : index
    %c0_74 = arith.constant 0 : index
    %240 = vector.load %arg10[%c0_73, %c0_74] : memref<128x128xf32, #tpu.memory_space<vmem>>, vector<128x128xf32>
    tpu.vector_store %arg10[%c0_73, %c0_74], %239 {strides = array<i32>} : memref<128x128xf32, #tpu.memory_space<vmem>>, vector<128x128xf32>,
    %c0_75 = arith.constant 0 : index
    %c0_76 = arith.constant 0 : index
    %241 = vector.load %arg5[%c0_75, %c0_76] : memref<32x128xbf16, #tpu.memory_space<vmem>>, vector<32x128xbf16>
    %cst_77 = arith.constant 0.000000e+00 : f32
    %242 = vector.broadcast %cst_77 : f32 to vector<16x32xf32>
    %cst_78 = arith.constant 0.000000e+00 : f32
    %243 = vector.broadcast %cst_78 : f32 to vector<16x32xf32>
    %c0_i32_79 = arith.constant 0 : i32
    %c16_i32_80 = arith.constant 16 : i32
    %244 = arith.muli %c0_i32_79, %c16_i32_80 : i32
    %245 = tpu.assume_multiple %244, 16 : i32
    %246 = arith.truncf %242 : vector<16x32xf32> to vector<16x32xbf16>
    %cst_81 = arith.constant dense<0.000000e+00> : vector<16x128xf32>
    %247 = tpu.matmul %246, %241, %cst_81 {dimension_numbers = #tpu.dot_dimension_numbers<[1], [0], [0], [1], [0, 0, 1, 1], [], []>} : vector<16x32xbf16>, vector<32x128xbf16>, vector<16x128xf32> -> vector<16x128xf32>
    %248 = arith.index_cast %245 : i32 to index
    %c0_82 = arith.constant 0 : index
    %249 = vector.load %arg10[%248, %c0_82] : memref<128x128xf32, #tpu.memory_space<vmem>>, vector<16x128xf32>
    %250 = arith.addf %247, %249 : vector<16x128xf32>
    %251 = vector.extract_strided_slice %250 {offsets = [0, 0], sizes = [16, 96], strides = [1, 1]} : vector<16x128xf32> to vector<16x96xf32>
    %cst_83 = arith.constant 5.000000e-01 : f32
    %252 = vector.broadcast %cst_83 : f32 to vector<16x96xf32>
    %253 = arith.mulf %252, %251 : vector<16x96xf32>
    %254 = math.tanh %253 : vector<16x96xf32>
    %cst_84 = arith.constant 5.000000e-01 : f32
    %255 = vector.broadcast %cst_84 : f32 to vector<16x96xf32>
    %256 = arith.mulf %255, %254 : vector<16x96xf32>
    %cst_85 = arith.constant 5.000000e-01 : f32
    %257 = vector.broadcast %cst_85 : f32 to vector<16x96xf32>
    %258 = arith.addf %256, %257 : vector<16x96xf32>
    %259 = vector.extract_strided_slice %258 {offsets = [0, 0], sizes = [16, 32], strides = [1, 1]} : vector<16x96xf32> to vector<16x32xf32>
    %260 = vector.extract_strided_slice %258 {offsets = [0, 32], sizes = [16, 32], strides = [1, 1]} : vector<16x96xf32> to vector<16x32xf32>
    %261 = vector.extract_strided_slice %258 {offsets = [0, 64], sizes = [16, 32], strides = [1, 1]} : vector<16x96xf32> to vector<16x32xf32>
    %262 = vector.extract_strided_slice %250 {offsets = [0, 96], sizes = [16, 32], strides = [1, 1]} : vector<16x128xf32> to vector<16x32xf32>
    %263 = math.tanh %262 : vector<16x32xf32>
    %264 = arith.mulf %260, %243 : vector<16x32xf32>
    %265 = arith.mulf %259, %263 : vector<16x32xf32>
    %266 = arith.addf %264, %265 : vector<16x32xf32>
    %267 = math.tanh %266 : vector<16x32xf32>
    %268 = arith.mulf %261, %267 : vector<16x32xf32>
    %c1_i32_86 = arith.constant 1 : i32
    %c16_i32_87 = arith.constant 16 : i32
    %269 = arith.muli %c1_i32_86, %c16_i32_87 : i32
    %270 = tpu.assume_multiple %269, 16 : i32
    %271 = arith.truncf %268 : vector<16x32xf32> to vector<16x32xbf16>
    %cst_88 = arith.constant dense<0.000000e+00> : vector<16x128xf32>
    %272 = tpu.matmul %271, %241, %cst_88 {dimension_numbers = #tpu.dot_dimension_numbers<[1], [0], [0], [1], [0, 0, 1, 1], [], []>} : vector<16x32xbf16>, vector<32x128xbf16>, vector<16x128xf32> -> vector<16x128xf32>
    %273 = arith.index_cast %270 : i32 to index
    %c0_89 = arith.constant 0 : index
    %274 = vector.load %arg10[%273, %c0_89] : memref<128x128xf32, #tpu.memory_space<vmem>>, vector<16x128xf32>
    %275 = arith.addf %272, %274 : vector<16x128xf32>
    %276 = vector.extract_strided_slice %275 {offsets = [0, 0], sizes = [16, 96], strides = [1, 1]} : vector<16x128xf32> to vector<16x96xf32>
    %cst_90 = arith.constant 5.000000e-01 : f32
    %277 = vector.broadcast %cst_90 : f32 to vector<16x96xf32>
    %278 = arith.mulf %277, %276 : vector<16x96xf32>
    %279 = math.tanh %278 : vector<16x96xf32>
    %cst_91 = arith.constant 5.000000e-01 : f32
    %280 = vector.broadcast %cst_91 : f32 to vector<16x96xf32>
    %281 = arith.mulf %280, %279 : vector<16x96xf32>
    %cst_92 = arith.constant 5.000000e-01 : f32
    %282 = vector.broadcast %cst_92 : f32 to vector<16x96xf32>
    %283 = arith.addf %281, %282 : vector<16x96xf32>
    %284 = vector.extract_strided_slice %283 {offsets = [0, 0], sizes = [16, 32], strides = [1, 1]} : vector<16x96xf32> to vector<16x32xf32>
    %285 = vector.extract_strided_slice %283 {offsets = [0, 32], sizes = [16, 32], strides = [1, 1]} : vector<16x96xf32> to vector<16x32xf32>
    %286 = vector.extract_strided_slice %283 {offsets = [0, 64], sizes = [16, 32], strides = [1, 1]} : vector<16x96xf32> to vector<16x32xf32>
    %287 = vector.extract_strided_slice %275 {offsets = [0, 96], sizes = [16, 32], strides = [1, 1]} : vector<16x128xf32> to vector<16x32xf32>
    %288 = math.tanh %287 : vector<16x32xf32>
    %289 = arith.mulf %285, %266 : vector<16x32xf32>
    %290 = arith.mulf %284, %288 : vector<16x32xf32>
    %291 = arith.addf %289, %290 : vector<16x32xf32>
    %292 = math.tanh %291 : vector<16x32xf32>
    %293 = arith.mulf %286, %292 : vector<16x32xf32>
    %c2_i32_93 = arith.constant 2 : i32
    %c16_i32_94 = arith.constant 16 : i32
    %294 = arith.muli %c2_i32_93, %c16_i32_94 : i32
    %295 = tpu.assume_multiple %294, 16 : i32
    %296 = arith.truncf %293 : vector<16x32xf32> to vector<16x32xbf16>
    %cst_95 = arith.constant dense<0.000000e+00> : vector<16x128xf32>
    %297 = tpu.matmul %296, %241, %cst_95 {dimension_numbers = #tpu.dot_dimension_numbers<[1], [0], [0], [1], [0, 0, 1, 1], [], []>} : vector<16x32xbf16>, vector<32x128xbf16>, vector<16x128xf32> -> vector<16x128xf32>
    %298 = arith.index_cast %295 : i32 to index
    %c0_96 = arith.constant 0 : index
    %299 = vector.load %arg10[%298, %c0_96] : memref<128x128xf32, #tpu.memory_space<vmem>>, vector<16x128xf32>
    %300 = arith.addf %297, %299 : vector<16x128xf32>
    %301 = vector.extract_strided_slice %300 {offsets = [0, 0], sizes = [16, 96], strides = [1, 1]} : vector<16x128xf32> to vector<16x96xf32>
    %cst_97 = arith.constant 5.000000e-01 : f32
    %302 = vector.broadcast %cst_97 : f32 to vector<16x96xf32>
    %303 = arith.mulf %302, %301 : vector<16x96xf32>
    %304 = math.tanh %303 : vector<16x96xf32>
    %cst_98 = arith.constant 5.000000e-01 : f32
    %305 = vector.broadcast %cst_98 : f32 to vector<16x96xf32>
    %306 = arith.mulf %305, %304 : vector<16x96xf32>
    %cst_99 = arith.constant 5.000000e-01 : f32
    %307 = vector.broadcast %cst_99 : f32 to vector<16x96xf32>
    %308 = arith.addf %306, %307 : vector<16x96xf32>
    %309 = vector.extract_strided_slice %308 {offsets = [0, 0], sizes = [16, 32], strides = [1, 1]} : vector<16x96xf32> to vector<16x32xf32>
    %310 = vector.extract_strided_slice %308 {offsets = [0, 32], sizes = [16, 32], strides = [1, 1]} : vector<16x96xf32> to vector<16x32xf32>
    %311 = vector.extract_strided_slice %308 {offsets = [0, 64], sizes = [16, 32], strides = [1, 1]} : vector<16x96xf32> to vector<16x32xf32>
    %312 = vector.extract_strided_slice %300 {offsets = [0, 96], sizes = [16, 32], strides = [1, 1]} : vector<16x128xf32> to vector<16x32xf32>
    %313 = math.tanh %312 : vector<16x32xf32>
    %314 = arith.mulf %310, %291 : vector<16x32xf32>
    %315 = arith.mulf %309, %313 : vector<16x32xf32>
    %316 = arith.addf %314, %315 : vector<16x32xf32>
    %317 = math.tanh %316 : vector<16x32xf32>
    %318 = arith.mulf %311, %317 : vector<16x32xf32>
    %c3_i32_100 = arith.constant 3 : i32
    %c16_i32_101 = arith.constant 16 : i32
    %319 = arith.muli %c3_i32_100, %c16_i32_101 : i32
    %320 = tpu.assume_multiple %319, 16 : i32
    %321 = arith.truncf %318 : vector<16x32xf32> to vector<16x32xbf16>
    %cst_102 = arith.constant dense<0.000000e+00> : vector<16x128xf32>
    %322 = tpu.matmul %321, %241, %cst_102 {dimension_numbers = #tpu.dot_dimension_numbers<[1], [0], [0], [1], [0, 0, 1, 1], [], []>} : vector<16x32xbf16>, vector<32x128xbf16>, vector<16x128xf32> -> vector<16x128xf32>
    %323 = arith.index_cast %320 : i32 to index
    %c0_103 = arith.constant 0 : index
    %324 = vector.load %arg10[%323, %c0_103] : memref<128x128xf32, #tpu.memory_space<vmem>>, vector<16x128xf32>
    %325 = arith.addf %322, %324 : vector<16x128xf32>
    %326 = vector.extract_strided_slice %325 {offsets = [0, 0], sizes = [16, 96], strides = [1, 1]} : vector<16x128xf32> to vector<16x96xf32>
    %cst_104 = arith.constant 5.000000e-01 : f32
    %327 = vector.broadcast %cst_104 : f32 to vector<16x96xf32>
    %328 = arith.mulf %327, %326 : vector<16x96xf32>
    %329 = math.tanh %328 : vector<16x96xf32>
    %cst_105 = arith.constant 5.000000e-01 : f32
    %330 = vector.broadcast %cst_105 : f32 to vector<16x96xf32>
    %331 = arith.mulf %330, %329 : vector<16x96xf32>
    %cst_106 = arith.constant 5.000000e-01 : f32
    %332 = vector.broadcast %cst_106 : f32 to vector<16x96xf32>
    %333 = arith.addf %331, %332 : vector<16x96xf32>
    %334 = vector.extract_strided_slice %333 {offsets = [0, 0], sizes = [16, 32], strides = [1, 1]} : vector<16x96xf32> to vector<16x32xf32>
    %335 = vector.extract_strided_slice %333 {offsets = [0, 32], sizes = [16, 32], strides = [1, 1]} : vector<16x96xf32> to vector<16x32xf32>
    %336 = vector.extract_strided_slice %333 {offsets = [0, 64], sizes = [16, 32], strides = [1, 1]} : vector<16x96xf32> to vector<16x32xf32>
    %337 = vector.extract_strided_slice %325 {offsets = [0, 96], sizes = [16, 32], strides = [1, 1]} : vector<16x128xf32> to vector<16x32xf32>
    %338 = math.tanh %337 : vector<16x32xf32>
    %339 = arith.mulf %335, %316 : vector<16x32xf32>
    %340 = arith.mulf %334, %338 : vector<16x32xf32>
    %341 = arith.addf %339, %340 : vector<16x32xf32>
    %342 = math.tanh %341 : vector<16x32xf32>
    %343 = arith.mulf %336, %342 : vector<16x32xf32>
    %c4_i32_107 = arith.constant 4 : i32
    %c16_i32_108 = arith.constant 16 : i32
    %344 = arith.muli %c4_i32_107, %c16_i32_108 : i32
    %345 = tpu.assume_multiple %344, 16 : i32
    %346 = arith.truncf %343 : vector<16x32xf32> to vector<16x32xbf16>
    %cst_109 = arith.constant dense<0.000000e+00> : vector<16x128xf32>
    %347 = tpu.matmul %346, %241, %cst_109 {dimension_numbers = #tpu.dot_dimension_numbers<[1], [0], [0], [1], [0, 0, 1, 1], [], []>} : vector<16x32xbf16>, vector<32x128xbf16>, vector<16x128xf32> -> vector<16x128xf32>
    %348 = arith.index_cast %345 : i32 to index
    %c0_110 = arith.constant 0 : index
    %349 = vector.load %arg10[%348, %c0_110] : memref<128x128xf32, #tpu.memory_space<vmem>>, vector<16x128xf32>
    %350 = arith.addf %347, %349 : vector<16x128xf32>
    %351 = vector.extract_strided_slice %350 {offsets = [0, 0], sizes = [16, 96], strides = [1, 1]} : vector<16x128xf32> to vector<16x96xf32>
    %cst_111 = arith.constant 5.000000e-01 : f32
    %352 = vector.broadcast %cst_111 : f32 to vector<16x96xf32>
    %353 = arith.mulf %352, %351 : vector<16x96xf32>
    %354 = math.tanh %353 : vector<16x96xf32>
    %cst_112 = arith.constant 5.000000e-01 : f32
    %355 = vector.broadcast %cst_112 : f32 to vector<16x96xf32>
    %356 = arith.mulf %355, %354 : vector<16x96xf32>
    %cst_113 = arith.constant 5.000000e-01 : f32
    %357 = vector.broadcast %cst_113 : f32 to vector<16x96xf32>
    %358 = arith.addf %356, %357 : vector<16x96xf32>
    %359 = vector.extract_strided_slice %358 {offsets = [0, 0], sizes = [16, 32], strides = [1, 1]} : vector<16x96xf32> to vector<16x32xf32>
    %360 = vector.extract_strided_slice %358 {offsets = [0, 32], sizes = [16, 32], strides = [1, 1]} : vector<16x96xf32> to vector<16x32xf32>
    %361 = vector.extract_strided_slice %358 {offsets = [0, 64], sizes = [16, 32], strides = [1, 1]} : vector<16x96xf32> to vector<16x32xf32>
    %362 = vector.extract_strided_slice %350 {offsets = [0, 96], sizes = [16, 32], strides = [1, 1]} : vector<16x128xf32> to vector<16x32xf32>
    %363 = math.tanh %362 : vector<16x32xf32>
    %364 = arith.mulf %360, %341 : vector<16x32xf32>
    %365 = arith.mulf %359, %363 : vector<16x32xf32>
    %366 = arith.addf %364, %365 : vector<16x32xf32>
    %367 = math.tanh %366 : vector<16x32xf32>
    %368 = arith.mulf %361, %367 : vector<16x32xf32>
    %c5_i32_114 = arith.constant 5 : i32
    %c16_i32_115 = arith.constant 16 : i32
    %369 = arith.muli %c5_i32_114, %c16_i32_115 : i32
    %370 = tpu.assume_multiple %369, 16 : i32
    %371 = arith.truncf %368 : vector<16x32xf32> to vector<16x32xbf16>
    %cst_116 = arith.constant dense<0.000000e+00> : vector<16x128xf32>
    %372 = tpu.matmul %371, %241, %cst_116 {dimension_numbers = #tpu.dot_dimension_numbers<[1], [0], [0], [1], [0, 0, 1, 1], [], []>} : vector<16x32xbf16>, vector<32x128xbf16>, vector<16x128xf32> -> vector<16x128xf32>
    %373 = arith.index_cast %370 : i32 to index
    %c0_117 = arith.constant 0 : index
    %374 = vector.load %arg10[%373, %c0_117] : memref<128x128xf32, #tpu.memory_space<vmem>>, vector<16x128xf32>
    %375 = arith.addf %372, %374 : vector<16x128xf32>
    %376 = vector.extract_strided_slice %375 {offsets = [0, 0], sizes = [16, 96], strides = [1, 1]} : vector<16x128xf32> to vector<16x96xf32>
    %cst_118 = arith.constant 5.000000e-01 : f32
    %377 = vector.broadcast %cst_118 : f32 to vector<16x96xf32>
    %378 = arith.mulf %377, %376 : vector<16x96xf32>
    %379 = math.tanh %378 : vector<16x96xf32>
    %cst_119 = arith.constant 5.000000e-01 : f32
    %380 = vector.broadcast %cst_119 : f32 to vector<16x96xf32>
    %381 = arith.mulf %380, %379 : vector<16x96xf32>
    %cst_120 = arith.constant 5.000000e-01 : f32
    %382 = vector.broadcast %cst_120 : f32 to vector<16x96xf32>
    %383 = arith.addf %381, %382 : vector<16x96xf32>
    %384 = vector.extract_strided_slice %383 {offsets = [0, 0], sizes = [16, 32], strides = [1, 1]} : vector<16x96xf32> to vector<16x32xf32>
    %385 = vector.extract_strided_slice %383 {offsets = [0, 32], sizes = [16, 32], strides = [1, 1]} : vector<16x96xf32> to vector<16x32xf32>
    %386 = vector.extract_strided_slice %383 {offsets = [0, 64], sizes = [16, 32], strides = [1, 1]} : vector<16x96xf32> to vector<16x32xf32>
    %387 = vector.extract_strided_slice %375 {offsets = [0, 96], sizes = [16, 32], strides = [1, 1]} : vector<16x128xf32> to vector<16x32xf32>
    %388 = math.tanh %387 : vector<16x32xf32>
    %389 = arith.mulf %385, %366 : vector<16x32xf32>
    %390 = arith.mulf %384, %388 : vector<16x32xf32>
    %391 = arith.addf %389, %390 : vector<16x32xf32>
    %392 = math.tanh %391 : vector<16x32xf32>
    %393 = arith.mulf %386, %392 : vector<16x32xf32>
    %c6_i32_121 = arith.constant 6 : i32
    %c16_i32_122 = arith.constant 16 : i32
    %394 = arith.muli %c6_i32_121, %c16_i32_122 : i32
    %395 = tpu.assume_multiple %394, 16 : i32
    %396 = arith.truncf %393 : vector<16x32xf32> to vector<16x32xbf16>
    %cst_123 = arith.constant dense<0.000000e+00> : vector<16x128xf32>
    %397 = tpu.matmul %396, %241, %cst_123 {dimension_numbers = #tpu.dot_dimension_numbers<[1], [0], [0], [1], [0, 0, 1, 1], [], []>} : vector<16x32xbf16>, vector<32x128xbf16>, vector<16x128xf32> -> vector<16x128xf32>
    %398 = arith.index_cast %395 : i32 to index
    %c0_124 = arith.constant 0 : index
    %399 = vector.load %arg10[%398, %c0_124] : memref<128x128xf32, #tpu.memory_space<vmem>>, vector<16x128xf32>
    %400 = arith.addf %397, %399 : vector<16x128xf32>
    %401 = vector.extract_strided_slice %400 {offsets = [0, 0], sizes = [16, 96], strides = [1, 1]} : vector<16x128xf32> to vector<16x96xf32>
    %cst_125 = arith.constant 5.000000e-01 : f32
    %402 = vector.broadcast %cst_125 : f32 to vector<16x96xf32>
    %403 = arith.mulf %402, %401 : vector<16x96xf32>
    %404 = math.tanh %403 : vector<16x96xf32>
    %cst_126 = arith.constant 5.000000e-01 : f32
    %405 = vector.broadcast %cst_126 : f32 to vector<16x96xf32>
    %406 = arith.mulf %405, %404 : vector<16x96xf32>
    %cst_127 = arith.constant 5.000000e-01 : f32
    %407 = vector.broadcast %cst_127 : f32 to vector<16x96xf32>
    %408 = arith.addf %406, %407 : vector<16x96xf32>
    %409 = vector.extract_strided_slice %408 {offsets = [0, 0], sizes = [16, 32], strides = [1, 1]} : vector<16x96xf32> to vector<16x32xf32>
    %410 = vector.extract_strided_slice %408 {offsets = [0, 32], sizes = [16, 32], strides = [1, 1]} : vector<16x96xf32> to vector<16x32xf32>
    %411 = vector.extract_strided_slice %408 {offsets = [0, 64], sizes = [16, 32], strides = [1, 1]} : vector<16x96xf32> to vector<16x32xf32>
    %412 = vector.extract_strided_slice %400 {offsets = [0, 96], sizes = [16, 32], strides = [1, 1]} : vector<16x128xf32> to vector<16x32xf32>
    %413 = math.tanh %412 : vector<16x32xf32>
    %414 = arith.mulf %410, %391 : vector<16x32xf32>
    %415 = arith.mulf %409, %413 : vector<16x32xf32>
    %416 = arith.addf %414, %415 : vector<16x32xf32>
    %417 = math.tanh %416 : vector<16x32xf32>
    %418 = arith.mulf %411, %417 : vector<16x32xf32>
    %c7_i32_128 = arith.constant 7 : i32
    %c16_i32_129 = arith.constant 16 : i32
    %419 = arith.muli %c7_i32_128, %c16_i32_129 : i32
    %420 = tpu.assume_multiple %419, 16 : i32
    %421 = arith.truncf %418 : vector<16x32xf32> to vector<16x32xbf16>
    %cst_130 = arith.constant dense<0.000000e+00> : vector<16x128xf32>
    %422 = tpu.matmul %421, %241, %cst_130 {dimension_numbers = #tpu.dot_dimension_numbers<[1], [0], [0], [1], [0, 0, 1, 1], [], []>} : vector<16x32xbf16>, vector<32x128xbf16>, vector<16x128xf32> -> vector<16x128xf32>
    %423 = arith.index_cast %420 : i32 to index
    %c0_131 = arith.constant 0 : index
    %424 = vector.load %arg10[%423, %c0_131] : memref<128x128xf32, #tpu.memory_space<vmem>>, vector<16x128xf32>
    %425 = arith.addf %422, %424 : vector<16x128xf32>
    %426 = vector.extract_strided_slice %425 {offsets = [0, 0], sizes = [16, 96], strides = [1, 1]} : vector<16x128xf32> to vector<16x96xf32>
    %cst_132 = arith.constant 5.000000e-01 : f32
    %427 = vector.broadcast %cst_132 : f32 to vector<16x96xf32>
    %428 = arith.mulf %427, %426 : vector<16x96xf32>
    %429 = math.tanh %428 : vector<16x96xf32>
    %cst_133 = arith.constant 5.000000e-01 : f32
    %430 = vector.broadcast %cst_133 : f32 to vector<16x96xf32>
    %431 = arith.mulf %430, %429 : vector<16x96xf32>
    %cst_134 = arith.constant 5.000000e-01 : f32
    %432 = vector.broadcast %cst_134 : f32 to vector<16x96xf32>
    %433 = arith.addf %431, %432 : vector<16x96xf32>
    %434 = vector.extract_strided_slice %433 {offsets = [0, 0], sizes = [16, 32], strides = [1, 1]} : vector<16x96xf32> to vector<16x32xf32>
    %435 = vector.extract_strided_slice %433 {offsets = [0, 32], sizes = [16, 32], strides = [1, 1]} : vector<16x96xf32> to vector<16x32xf32>
    %436 = vector.extract_strided_slice %433 {offsets = [0, 64], sizes = [16, 32], strides = [1, 1]} : vector<16x96xf32> to vector<16x32xf32>
    %437 = vector.extract_strided_slice %425 {offsets = [0, 96], sizes = [16, 32], strides = [1, 1]} : vector<16x128xf32> to vector<16x32xf32>
    %438 = math.tanh %437 : vector<16x32xf32>
    %439 = arith.mulf %435, %416 : vector<16x32xf32>
    %440 = arith.mulf %434, %438 : vector<16x32xf32>
    %441 = arith.addf %439, %440 : vector<16x32xf32>
    %442 = math.tanh %441 : vector<16x32xf32>
    %443 = arith.mulf %436, %442 : vector<16x32xf32>
    %c8_i32_135 = arith.constant 8 : i32
    %444 = arith.truncf %443 : vector<16x32xf32> to vector<16x32xbf16>
    %c0_136 = arith.constant 0 : index
    %c0_137 = arith.constant 0 : index
    %445 = vector.load %arg7[%c0_136, %c0_137] : memref<32x4xbf16, #tpu.memory_space<vmem>>, vector<32x4xbf16>
    %cst_138 = arith.constant dense<0.000000e+00> : vector<16x4xf32>
    %446 = tpu.matmul %444, %445, %cst_138 {dimension_numbers = #tpu.dot_dimension_numbers<[1], [0], [0], [1], [0, 0, 1, 1], [], []>} : vector<16x32xbf16>, vector<32x4xbf16>, vector<16x4xf32> -> vector<16x4xf32>
    %c0_139 = arith.constant 0 : index
    %c0_140 = arith.constant 0 : index
    %447 = vector.load %arg8[%c0_139, %c0_140] : memref<1x4xf32, #tpu.memory_space<vmem>>, vector<1x4xf32>
    %448 = vector.broadcast %447 : vector<1x4xf32> to vector<16x4xf32>
    %449 = arith.addf %446, %448 : vector<16x4xf32>
    %c0_141 = arith.constant 0 : index
    %c0_142 = arith.constant 0 : index
    %450 = vector.load %arg9[%c0_141, %c0_142] : memref<16x4xf32, #tpu.memory_space<vmem>>, vector<16x4xf32>
    tpu.vector_store %arg9[%c0_141, %c0_142], %449 {strides = array<i32>} : memref<16x4xf32, #tpu.memory_space<vmem>>, vector<16x4xf32>,
    return
  }
}

</mosaic_0001>

<bundles_post_ra>
// kernel: model_rnn_handler_forward.1
= control target key start
LH: loop header
LB: loop body
LE: loop exit
PB: predicated region body
PF: predicated region fallthrough
CT: control target
= control target key end

     0   :  { %vm101_vm0 = vcmask 130048   ;;  %v1971_v4 = vmov 0   ;;  %s1972_s17 = smov 32   ;;  %s1973_s20 = smov 64   ;;  %vm209_vm1 = vcmask 261120   ;;  %vm281_vm2 = vcmask 257024   ;;  %s2463_s1 = inlined_call_operand.vmem [shape: bf16[16,128], index: 1, kind: input, shape index: {}]   ;;  %s2464_s2 = inlined_call_operand.vmem [shape: bf16[32,128], index: 2, kind: input, shape index: {}]   ;;  %s2465_s0 = inlined_call_operand.vmem [shape: bf16[128,16], index: 0, kind: input, shape index: {}]   ;;  %s2466_s3 = inlined_call_operand.vmem [shape: f32[1,128], index: 3, kind: input, shape index: {}]   ;;  %s2467_s4 = inlined_call_operand.vmem [shape: bf16[32,128], index: 4, kind: input, shape index: {}]   ;;  %s2468_s6 = inlined_call_operand.vmem [shape: f32[1,128], index: 6, kind: input, shape index: {}]   ;;  %s2469_s5 = inlined_call_operand.vmem [shape: bf16[32,128], index: 5, kind: input, shape index: {}]   ;;  %s2470_s7 = inlined_call_operand.vmem [shape: bf16[32,4], index: 7, kind: input, shape index: {}]   ;;  %s2471_s8 = inlined_call_operand.vmem [shape: f32[1,4], index: 8, kind: input, shape index: {}]   ;;  %s2472_s9 = inlined_call_operand.vmem [shape: f32[16,4], index: 9, kind: output, shape index: {}]  }
   0x1   :  { %v1755_v0 = vld [vmem:[%s2463_s1] sm:$0xff]  ;;  %v2030_v1 = vld [vmem:[%s2464_s2 + $0x8] sm:$0xff]  ;;  %vm1609_vm3 = vcmask 31744  }
   0x2   :  { %v1747_v2 = vld [vmem:[%s2465_s0] sm:$0xff]  ;;  %133 = vmatpush.bf16.msra.mxu0 %v1755_v0  ;;  %219 = vmatpush.bf16.msra.mxu1 %v2030_v1  ;;  %v1748_v36 = vld [vmem:[%s2465_s0 + $0x8] sm:$0xff] }
   0x3   :  { %v2039_v3 = vld [vmem:[%s2464_s2] sm:$0xff]  ;;  %301 = vmatpush.bf16.msra.mxu2 %v2030_v1 }
   0x4   :  { %v2057_v5 = vld [vmem:[%s2466_s3] ss:$0 sm:$0xff] }
   0x5   :  { %1652 = vmatmul.msk.bf16.vlgmr.msra.gmra.mxu0 %vm101_vm0, %v1747_v2 }
   0x6   :  { %629 = vmatpush.bf16.msrb.mxu0 %v2030_v1  ;;  %220 = vmatpush.bf16.msra.mxu1 %v2039_v3 }
   0x7   :  { %302 = vmatpush.bf16.msra.mxu2 %v2039_v3 }
   0x9   :  { %221 = vmatmul.bf16.vlgmr.msra.gmra.mxu1 %v1971_v4 }
   0xa   :  { %465 = vmatpush.bf16.msrb.mxu1 %v2030_v1  ;;  %630 = vmatpush.bf16.msrb.mxu0 %v2039_v3 }
   0xb   :  { %383 = vmatpush.bf16.msrb.mxu2 %v2030_v1 }
   0xe   :  { %466 = vmatpush.bf16.msrb.mxu1 %v2039_v3 }
   0xf   :  { %384 = vmatpush.bf16.msrb.mxu2 %v2039_v3 }
  0x12   :  { %711 = vmatpush.bf16.msra.mxu1 %v2030_v1 }
  0x15   :  { %1653 = vmatmul.msk.bf16.gmra.mxu0 %vm101_vm0, %v1748_v36 }
  0x16   :  { %712 = vmatpush.bf16.msra.mxu1 %v2039_v3 }
  0x82   :  { %v135_v6 = vpop.f32.mrf.mxu0 }
  0x83   :  { %v136_v7 = vadd.f32 %v2057_v5, %v135_v6 }
  0x86   :  { %v222_v8 = vpop.f32.mrf.mxu1 }
  0x87   :  { %v223_v9 = vadd.f32 %v222_v8, %v136_v7 }
  0x89   :  { %1778 = vtanh.f32 %v223_v9  ;;  %v227_v16 = vmul.f32 0.5, %v223_v9 }
  0x8a   :  { %v137_v10 = vpop.f32.mrf.mxu0 }
  0x8b   :  { %v138_v11 = vadd.f32 %v2057_v5, %v137_v10 }
  0x8e   :  { %v224_v12 = vpop.f32.mrf.mxu1 }
  0x8f   :  { %v1779_v13 = vpop.eup %1778  ;;  %v225_v14 = vadd.f32 %v224_v12, %v138_v11 }
  0x90   :  { %241 = vrot.lane.b32.xlu0 %v1779_v13, %s1972_s17 }
  0x91   :  { %1780 = vtanh.f32 %v225_v14  ;;  %v228_v17 = vmul.f32 0.5, %v225_v14 }
  0x92   :  { %1782 = vtanh.f32 %v227_v16  ;;  %v140_v47 = vpop.f32.mrf.mxu0 }
  0x93   :  { %1784 = vtanh.f32 %v228_v17  ;;  %v141_v48 = vadd.f32 %v2057_v5, %v140_v47  ;;  %v1749_v17 = vld [vmem:[%s2465_s0 + $0x10] sm:$0xff] }
  0x94   :  { %1654 = vmatmul.msk.bf16.gmra.mxu0 %vm101_vm0, %v1749_v17 }
  0x97   :  { %v1781_v15 = vpop.eup %1780 }
  0x98   :  { %243 = vrot.lane.b32.xlu0 %v1781_v15, %s1972_s17  ;;  %v1783_v18 = vpop.eup %1782 }
  0x99   :  { %v231_v19 = vmul.f32 0.5, %v1783_v18  ;;  %v1785_v21 = vpop.eup %1784 }
  0x9a   :  { %v232_v24 = vmul.f32 0.5, %v1785_v21  ;;  %v142_v51 = vpop.f32.mrf.mxu0 }
  0x9b   :  { %v233_v20 = vadd.f32 0.5, %v231_v19  ;;  %v143_v52 = vadd.f32 %v2057_v5, %v142_v51 }
  0x9c   :  { %v234_v25 = vadd.f32 0.5, %v232_v24 }
  0x9d   :  { %v237_v28 = vmul.f32 0.0, %v233_v20 }
  0x9e   :  { %v238_v31 = vmul.f32 0.0, %v234_v25 }
 0x102   :  { %v242_v22 = vpop.permute.xlu0 %241 }
 0x103   :  { %v247_v23 = vmul.f32 %v242_v22, %v233_v20 }
 0x105   :  { %251 = vrot.lane.b32.xlu1 %v247_v23, %s1972_s17 }
 0x10a   :  { %v244_v26 = vpop.permute.xlu0 %243 }
 0x10b   :  { %v248_v27 = vmul.f32 %v244_v26, %v234_v25 }
 0x10d   :  { %253 = vrot.lane.b32.xlu1 %v248_v27, %s1972_s17 }
 0x177   :  { %v252_v29 = vpop.permute.xlu1 %251 }
 0x178   :  { %v2065_v30 = vadd.f32 %v252_v29, %v237_v28  ;;  %v145_v28 = vpop.f32.mrf.mxu0 }
 0x179   :  { %v146_v29 = vadd.f32 %v2057_v5, %v145_v28 }
 0x17a   :  { %1786 = vtanh.f32 %v2065_v30 }
 0x17f   :  { %v254_v32 = vpop.permute.xlu1 %253 }
 0x180   :  { %v1787_v33 = vpop.eup %1786  ;;  %v258_v34 = vadd.f32 %v254_v32, %v238_v31  ;;  %v147_v32 = vpop.f32.mrf.mxu0 }
 0x181   :  { %263 = vrot.lane.b32.xlu2 %v1787_v33, %s1972_s17  ;;  %v148_v33 = vadd.f32 %v2057_v5, %v147_v32 }
 0x182   :  { %1788 = vtanh.f32 %v258_v34 }
 0x188   :  { %v1789_v35 = vpop.eup %1788 }
 0x189   :  { %265 = vrot.lane.b32.xlu2 %v1789_v35, %s1972_s17 }
 0x1db   :  { %v264_v37 = vpop.permute.xlu2 %263 }
 0x1dc   :  { %v269_v38 = vmul.f32 %v264_v37, %v233_v20 }
 0x1de   :  { %v2074_v40 = vpack.c.bf16 %v269_v38, %v269_v38 }
 0x1e0   :  { %v287_v43 = vunpack.c.l.b16 %v2074_v40 }
 0x1e3   :  { %v266_v39 = vpop.permute.xlu2 %265 }
 0x1e4   :  { %v270_v41 = vmul.f32 %v266_v39, %v234_v25 }
 0x1e6   :  { %v2076_v42 = vpack.c.bf16 %v270_v41, %v270_v41 }
 0x1e8   :  { %v288_v44 = vunpack.c.l.b16 %v2076_v42 }
 0x1ea   :  { %v289_v45 = vpack.c.b16 %v288_v44, %v287_v43 }
 0x1ec   :  { %290 = vrot.lane.b32.xlu0 %v289_v45, %s1973_s20 }
 0x25e   :  { %v291_v46 = vpop.permute.xlu0 %290 }
 0x25f   :  { %1668 = vmatmul.msk.bf16.vlgmr.msra.gmra.mxu2 %vm209_vm1, %v291_v46 }
 0x260   :  { %547 = vmatpush.bf16.msra.mxu2 %v2030_v1 }
 0x264   :  { %548 = vmatpush.bf16.msra.mxu2 %v2039_v3 }
 0x2e2   :  { %v304_v49 = vpop.f32.mrf.mxu2 }
 0x2e3   :  { %v305_v50 = vadd.f32 %v304_v49, %v141_v48 }
 0x2e5   :  { %1790 = vtanh.f32 %v305_v50  ;;  %v309_v60 = vmul.f32 0.5, %v305_v50 }
 0x2ea   :  { %v306_v53 = vpop.f32.mrf.mxu2 }
 0x2eb   :  { %v1791_v54 = vpop.eup %1790  ;;  %v307_v55 = vadd.f32 %v306_v53, %v143_v52 }
 0x2ec   :  { %323 = vrot.lane.b32.xlu1 %v1791_v54, %s1972_s17 }
 0x2ed   :  { %1792 = vtanh.f32 %v307_v55  ;;  %v310_v57 = vmul.f32 0.5, %v307_v55 }
 0x2ef   :  { %1794 = vtanh.f32 %v310_v57 }
 0x2f0   :  { %1796 = vtanh.f32 %v309_v60 }
 0x2f3   :  { %v1793_v56 = vpop.eup %1792 }
 0x2f4   :  { %325 = vrot.lane.b32.xlu2 %v1793_v56, %s1972_s17 }
 0x2f5   :  { %v1795_v58 = vpop.eup %1794 }
 0x2f6   :  { %v314_v59 = vmul.f32 0.5, %v1795_v58  ;;  %v1797_v0 = vpop.eup %1796  ;;  %v1750_v58 = vld [vmem:[%s2465_s0 + $0x18] sm:$0xff] }
 0x2f7   :  { %v313_v2 = vmul.f32 0.5, %v1797_v0  ;;  %1655 = vmatmul.msk.bf16.gmra.mxu0 %vm101_vm0, %v1750_v58 }
 0x2f8   :  { %v316_v61 = vadd.f32 0.5, %v314_v59 }
 0x2f9   :  { %v315_v6 = vadd.f32 0.5, %v313_v2 }
 0x2fa   :  { %v320_v9 = vmul.f32 %v316_v61, %v258_v34 }
 0x2fb   :  { %v319_v13 = vmul.f32 %v315_v6, %v2065_v30 }
 0x34e   :  { %v326_v62 = vpop.permute.xlu2 %325 }
 0x34f   :  { %v330_v63 = vmul.f32 %v326_v62, %v316_v61 }
 0x351   :  { %335 = vrot.lane.b32.xlu1 %v330_v63, %s1972_s17 }
 0x35e   :  { %v324_v7 = vpop.permute.xlu1 %323 }
 0x35f   :  { %v329_v8 = vmul.f32 %v324_v7, %v315_v6 }
 0x361   :  { %333 = vrot.lane.b32.xlu0 %v329_v8, %s1972_s17 }
 0x3c3   :  { %v336_v10 = vpop.permute.xlu1 %335 }
 0x3c4   :  { %v340_v11 = vadd.f32 %v336_v10, %v320_v9  ;;  %v150_v9 = vpop.f32.mrf.mxu0 }
 0x3c5   :  { %v151_v10 = vadd.f32 %v2057_v5, %v150_v9 }
 0x3c6   :  { %1798 = vtanh.f32 %v340_v11 }
 0x3cc   :  { %v1799_v12 = vpop.eup %1798 }
 0x3cd   :  { %347 = vrot.lane.b32.xlu0 %v1799_v12, %s1972_s17 }
 0x3d3   :  { %v334_v14 = vpop.permute.xlu0 %333 }
 0x3d4   :  { %v339_v15 = vadd.f32 %v334_v14, %v319_v13  ;;  %v152_v13 = vpop.f32.mrf.mxu0 }
 0x3d5   :  { %v153_v14 = vadd.f32 %v2057_v5, %v152_v13 }
 0x3d6   :  { %1800 = vtanh.f32 %v339_v15 }
 0x3dc   :  { %v1801_v16 = vpop.eup %1800 }
 0x3dd   :  { %345 = vrot.lane.b32.xlu2 %v1801_v16, %s1972_s17 }
 0x437   :  { %v346_v18 = vpop.permute.xlu2 %345 }
 0x438   :  { %v351_v19 = vmul.f32 %v346_v18, %v315_v6 }
 0x43a   :  { %v2097_v21 = vpack.c.bf16 %v351_v19, %v351_v19 }
 0x43c   :  { %v369_v24 = vunpack.c.l.b16 %v2097_v21 }
 0x43f   :  { %v348_v20 = vpop.permute.xlu0 %347 }
 0x440   :  { %v352_v22 = vmul.f32 %v348_v20, %v316_v61 }
 0x442   :  { %v2099_v23 = vpack.c.bf16 %v352_v22, %v352_v22 }
 0x444   :  { %v370_v25 = vunpack.c.l.b16 %v2099_v23 }
 0x446   :  { %v371_v26 = vpack.c.b16 %v370_v25, %v369_v24 }
 0x448   :  { %372 = vrot.lane.b32.xlu1 %v371_v26, %s1973_s20 }
 0x4ba   :  { %v373_v27 = vpop.permute.xlu1 %372 }
 0x4bb   :  { %1669 = vmatmul.msk.bf16.vlgmr.msrb.gmra.mxu2 %vm209_vm1, %v373_v27 }
 0x4bc   :  { %793 = vmatpush.bf16.msrb.mxu2 %v2030_v1 }
 0x4c0   :  { %794 = vmatpush.bf16.msrb.mxu2 %v2039_v3 }
 0x53e   :  { %v386_v30 = vpop.f32.mrf.mxu2 }
 0x53f   :  { %v387_v31 = vadd.f32 %v386_v30, %v146_v29 }
 0x541   :  { %1802 = vtanh.f32 %v387_v31  ;;  %v391_v1 = vmul.f32 0.5, %v387_v31 }
 0x546   :  { %v388_v34 = vpop.f32.mrf.mxu2 }
 0x547   :  { %v1803_v35 = vpop.eup %1802  ;;  %v389_v36 = vadd.f32 %v388_v34, %v148_v33 }
 0x548   :  { %405 = vrot.lane.b32.xlu2 %v1803_v35, %s1972_s17 }
 0x549   :  { %1804 = vtanh.f32 %v389_v36  ;;  %v392_v44 = vmul.f32 0.5, %v389_v36 }
 0x54a   :  { %1806 = vtanh.f32 %v391_v1 }
 0x54b   :  { %1808 = vtanh.f32 %v392_v44 }
 0x54f   :  { %v1805_v37 = vpop.eup %1804 }
 0x550   :  { %407 = vrot.lane.b32.xlu0 %v1805_v37, %s1972_s17  ;;  %v1807_v3 = vpop.eup %1806 }
 0x551   :  { %v395_v38 = vmul.f32 0.5, %v1807_v3  ;;  %v1809_v45 = vpop.eup %1808 }
 0x552   :  { %v396_v46 = vmul.f32 0.5, %v1809_v45 }
 0x553   :  { %v397_v39 = vadd.f32 0.5, %v395_v38 }
 0x554   :  { %v398_v47 = vadd.f32 0.5, %v396_v46 }
 0x555   :  { %v401_v50 = vmul.f32 %v397_v39, %v339_v15 }
 0x556   :  { %v402_v53 = vmul.f32 %v398_v47, %v340_v11 }
 0x5a2   :  { %v406_v41 = vpop.permute.xlu2 %405 }
 0x5a3   :  { %v411_v43 = vmul.f32 %v406_v41, %v397_v39 }
 0x5a5   :  { %415 = vrot.lane.b32.xlu1 %v411_v43, %s1972_s17 }
 0x5c2   :  { %v408_v48 = vpop.permute.xlu0 %407 }
 0x5c3   :  { %v412_v49 = vmul.f32 %v408_v48, %v398_v47 }
 0x5c5   :  { %417 = vrot.lane.b32.xlu2 %v412_v49, %s1972_s17 }
 0x617   :  { %v416_v51 = vpop.permute.xlu1 %415 }
 0x618   :  { %v421_v52 = vadd.f32 %v416_v51, %v401_v50 }
 0x61a   :  { %1810 = vtanh.f32 %v421_v52 }
 0x61f   :  { %v418_v54 = vpop.permute.xlu2 %417 }
 0x620   :  { %v1811_v55 = vpop.eup %1810  ;;  %v422_v56 = vadd.f32 %v418_v54, %v402_v53 }
 0x621   :  { %427 = vrot.lane.b32.xlu0 %v1811_v55, %s1972_s17 }
 0x622   :  { %1812 = vtanh.f32 %v422_v56 }
 0x628   :  { %v1813_v57 = vpop.eup %1812 }
 0x629   :  { %429 = vrot.lane.b32.xlu1 %v1813_v57, %s1972_s17 }
 0x693   :  { %v428_v59 = vpop.permute.xlu0 %427 }
 0x694   :  { %v433_v60 = vmul.f32 %v428_v59, %v397_v39  ;;  %v1751_v39 = vld [vmem:[%s2465_s0 + $0x20] sm:$0xff] }
 0x695   :  { %1656 = vmatmul.msk.bf16.gmra.mxu0 %vm101_vm0, %v1751_v39 }
 0x696   :  { %v2119_v62 = vpack.c.bf16 %v433_v60, %v433_v60 }
 0x698   :  { %v451_v2 = vunpack.c.l.b16 %v2119_v62 }
 0x69b   :  { %v430_v61 = vpop.permute.xlu1 %429 }
 0x69c   :  { %v434_v63 = vmul.f32 %v430_v61, %v398_v47 }
 0x69e   :  { %v2121_v0 = vpack.c.bf16 %v434_v63, %v434_v63 }
 0x6a0   :  { %v452_v6 = vunpack.c.l.b16 %v2121_v0 }
 0x6a2   :  { %v453_v7 = vpack.c.b16 %v452_v6, %v451_v2 }
 0x6a4   :  { %454 = vrot.lane.b32.xlu2 %v453_v7, %s1973_s20 }
 0x6fe   :  { %v455_v8 = vpop.permute.xlu2 %454 }
 0x6ff   :  { %1670 = vmatmul.msk.bf16.vlgmr.msrb.gmra.mxu1 %vm209_vm1, %v455_v8 }
 0x77c   :  { %v468_v11 = vpop.f32.mrf.mxu1 }
 0x77d   :  { %v469_v12 = vadd.f32 %v468_v11, %v151_v10 }
 0x77f   :  { %1814 = vtanh.f32 %v469_v12  ;;  %v473_v19 = vmul.f32 0.5, %v469_v12 }
 0x784   :  { %v470_v15 = vpop.f32.mrf.mxu1 }
 0x785   :  { %v1815_v16 = vpop.eup %1814  ;;  %v471_v17 = vadd.f32 %v470_v15, %v153_v14 }
 0x786   :  { %487 = vrot.lane.b32.xlu0 %v1815_v16, %s1972_s17 }
 0x787   :  { %1816 = vtanh.f32 %v471_v17  ;;  %v474_v20 = vmul.f32 0.5, %v471_v17 }
 0x788   :  { %1818 = vtanh.f32 %v473_v19 }
 0x789   :  { %1820 = vtanh.f32 %v474_v20 }
 0x78d   :  { %v1817_v18 = vpop.eup %1816 }
 0x78e   :  { %489 = vrot.lane.b32.xlu1 %v1817_v18, %s1972_s17  ;;  %v1819_v22 = vpop.eup %1818 }
 0x78f   :  { %v477_v24 = vmul.f32 0.5, %v1819_v22  ;;  %v1821_v26 = vpop.eup %1820 }
 0x790   :  { %v478_v29 = vmul.f32 0.5, %v1821_v26  ;;  %v1752_v26 = vld [vmem:[%s2465_s0 + $0x28] sm:$0xff] }
 0x791   :  { %v479_v25 = vadd.f32 0.5, %v477_v24  ;;  %1657 = vmatmul.msk.bf16.gmra.mxu0 %vm101_vm0, %v1752_v26 }
 0x792   :  { %v480_v30 = vadd.f32 0.5, %v478_v29 }
 0x793   :  { %v483_v33 = vmul.f32 %v479_v25, %v421_v52  ;;  %v155_v52 = vpop.f32.mrf.mxu0 }
 0x794   :  { %v484_v37 = vmul.f32 %v480_v30, %v422_v56  ;;  %v156_v53 = vadd.f32 %v2057_v5, %v155_v52 }
 0x79b   :  { %v157_v56 = vpop.f32.mrf.mxu0 }
 0x79c   :  { %v158_v57 = vadd.f32 %v2057_v5, %v157_v56 }
 0x7f8   :  { %v488_v27 = vpop.permute.xlu0 %487 }
 0x7f9   :  { %v493_v28 = vmul.f32 %v488_v27, %v479_v25  ;;  %v1753_v27 = vld [vmem:[%s2465_s0 + $0x30] sm:$0xff] }
 0x7fa   :  { %1658 = vmatmul.msk.bf16.gmra.mxu0 %vm101_vm0, %v1753_v27 }
 0x7fb   :  { %497 = vrot.lane.b32.xlu2 %v493_v28, %s1972_s17 }
 0x800   :  { %v490_v31 = vpop.permute.xlu1 %489 }
 0x801   :  { %v494_v32 = vmul.f32 %v490_v31, %v480_v30 }
 0x803   :  { %499 = vrot.lane.b32.xlu0 %v494_v32, %s1972_s17 }
 0x855   :  { %v498_v34 = vpop.permute.xlu2 %497 }
 0x856   :  { %v503_v35 = vadd.f32 %v498_v34, %v483_v33 }
 0x858   :  { %1822 = vtanh.f32 %v503_v35 }
 0x85e   :  { %v1823_v36 = vpop.eup %1822 }
 0x85f   :  { %509 = vrot.lane.b32.xlu1 %v1823_v36, %s1972_s17 }
 0x875   :  { %v500_v1 = vpop.permute.xlu0 %499 }
 0x876   :  { %v504_v3 = vadd.f32 %v500_v1, %v484_v37  ;;  %v1754_v37 = vld [vmem:[%s2465_s0 + $0x38] sm:$0xff] }
 0x877   :  { %1659 = vmatmul.msk.bf16.gmra.mxu0 %vm101_vm0, %v1754_v37 }
 0x878   :  { %1824 = vtanh.f32 %v504_v3 }
 0x87e   :  { %v1825_v38 = vpop.eup %1824 }
 0x87f   :  { %511 = vrot.lane.b32.xlu2 %v1825_v38, %s1972_s17 }
 0x8d1   :  { %v510_v41 = vpop.permute.xlu1 %509 }
 0x8d2   :  { %v515_v43 = vmul.f32 %v510_v41, %v479_v25 }
 0x8d4   :  { %v2139_v45 = vpack.c.bf16 %v515_v43, %v515_v43 }
 0x8d6   :  { %v533_v48 = vunpack.c.l.b16 %v2139_v45 }
 0x8d9   :  { %v512_v44 = vpop.permute.xlu2 %511 }
 0x8da   :  { %v516_v46 = vmul.f32 %v512_v44, %v480_v30 }
 0x8dc   :  { %v2141_v47 = vpack.c.bf16 %v516_v46, %v516_v46 }
 0x8de   :  { %v534_v49 = vunpack.c.l.b16 %v2141_v47 }
 0x8e0   :  { %v535_v50 = vpack.c.b16 %v534_v49, %v533_v48 }
 0x8e2   :  { %536 = vrot.lane.b32.xlu0 %v535_v50, %s1973_s20 }
 0x954   :  { %v537_v51 = vpop.permute.xlu0 %536 }
 0x955   :  { %1671 = vmatmul.msk.bf16.vlgmr.msra.gmra.mxu2 %vm209_vm1, %v537_v51 }
 0x9d8   :  { %v550_v54 = vpop.f32.mrf.mxu2 }
 0x9d9   :  { %v551_v55 = vadd.f32 %v550_v54, %v156_v53 }
 0x9db   :  { %1826 = vtanh.f32 %v551_v55  ;;  %v555_v7 = vmul.f32 0.5, %v551_v55 }
 0x9e0   :  { %v552_v58 = vpop.f32.mrf.mxu2 }
 0x9e1   :  { %v1827_v59 = vpop.eup %1826  ;;  %v553_v60 = vadd.f32 %v552_v58, %v158_v57 }
 0x9e2   :  { %569 = vrot.lane.b32.xlu1 %v1827_v59, %s1972_s17 }
 0x9e3   :  { %1828 = vtanh.f32 %v553_v60  ;;  %v556_v63 = vmul.f32 0.5, %v553_v60 }
 0x9e5   :  { %1830 = vtanh.f32 %v556_v63 }
 0x9e6   :  { %1832 = vtanh.f32 %v555_v7 }
 0x9e9   :  { %v1829_v61 = vpop.eup %1828 }
 0x9ea   :  { %571 = vrot.lane.b32.xlu2 %v1829_v61, %s1972_s17 }
 0x9eb   :  { %v1831_v2 = vpop.eup %1830 }
 0x9ec   :  { %v560_v6 = vmul.f32 0.5, %v1831_v2  ;;  %v1833_v11 = vpop.eup %1832 }
 0x9ed   :  { %v559_v12 = vmul.f32 0.5, %v1833_v11 }
 0x9ee   :  { %v562_v8 = vadd.f32 0.5, %v560_v6 }
 0x9ef   :  { %v561_v13 = vadd.f32 0.5, %v559_v12 }
 0x9f0   :  { %v566_v16 = vmul.f32 %v562_v8, %v504_v3  ;;  %v160_v3 = vpop.f32.mrf.mxu0 }
 0x9f1   :  { %v565_v20 = vmul.f32 %v561_v13, %v503_v35  ;;  %v161_v46 = vadd.f32 %v2057_v5, %v160_v3 }
 0x9f8   :  { %v162_v38 = vpop.f32.mrf.mxu0 }
 0x9f9   :  { %v163_v50 = vadd.f32 %v2057_v5, %v162_v38 }
 0xa00   :  { %v2178_v39 = vpop.f32.mrf.mxu0 }
 0xa08   :  { %v2180_v41 = vpop.f32.mrf.mxu0 }
 0xa09   :  { %v168_v3 = vadd.f32 %v2057_v5, %v2180_v41 }
 0xa10   :  { %v2182_v43 = vpop.f32.mrf.mxu0 }
 0xa18   :  { %v2184_v44 = vpop.f32.mrf.mxu0 }
 0xa44   :  { %v572_v9 = vpop.permute.xlu2 %571 }
 0xa45   :  { %v576_v10 = vmul.f32 %v572_v9, %v562_v8 }
 0xa47   :  { %581 = vrot.lane.b32.xlu1 %v576_v10, %s1972_s17 }
 0xa54   :  { %v570_v14 = vpop.permute.xlu1 %569 }
 0xa55   :  { %v575_v15 = vmul.f32 %v570_v14, %v561_v13 }
 0xa57   :  { %579 = vrot.lane.b32.xlu0 %v575_v15, %s1972_s17 }
 0xab9   :  { %v582_v17 = vpop.permute.xlu1 %581 }
 0xaba   :  { %v2153_v18 = vadd.f32 %v582_v17, %v566_v16  ;;  %v1767_v17 = vld [vmem:[%s2467_s4 + $0x8] sm:$0xff] }
 0xabb   :  { %964 = vmatpush.bf16.msra.mxu3 %v1767_v17 }
 0xabc   :  { %1834 = vtanh.f32 %v2153_v18 }
 0xac2   :  { %v1835_v19 = vpop.eup %1834 }
 0xac3   :  { %593 = vrot.lane.b32.xlu0 %v1835_v19, %s1972_s17 }
 0xac9   :  { %v580_v22 = vpop.permute.xlu0 %579 }
 0xaca   :  { %v585_v24 = vadd.f32 %v580_v22, %v565_v20 }
 0xacc   :  { %1836 = vtanh.f32 %v585_v24 }
 0xad2   :  { %v1837_v25 = vpop.eup %1836 }
 0xad3   :  { %591 = vrot.lane.b32.xlu2 %v1837_v25, %s1972_s17 }
 0xb2d   :  { %v592_v28 = vpop.permute.xlu2 %591 }
 0xb2e   :  { %v597_v29 = vmul.f32 %v592_v28, %v561_v13 }
 0xb30   :  { %v2166_v31 = vpack.c.bf16 %v597_v29, %v597_v29 }
 0xb32   :  { %v615_v34 = vunpack.c.l.b16 %v2166_v31 }
 0xb35   :  { %v594_v30 = vpop.permute.xlu0 %593 }
 0xb36   :  { %v598_v32 = vmul.f32 %v594_v30, %v562_v8 }
 0xb38   :  { %v2168_v33 = vpack.c.bf16 %v598_v32, %v598_v32  ;;  %v2224_v32 = vld [vmem:[%s2469_s5 + $0x8] sm:$0xff] }
 0xb39   :  { %1047 = vmatpush.bf16.msrb.mxu1 %v2224_v32  ;;  %1114 = vmatpush.bf16.msra.mxu2 %v2224_v32 }
 0xb3a   :  { %v616_v35 = vunpack.c.l.b16 %v2168_v33 }
 0xb3c   :  { %v617_v36 = vpack.c.b16 %v616_v35, %v615_v34  ;;  %v2230_v34 = vld [vmem:[%s2469_s5] sm:$0xff] }
 0xb3d   :  { %1048 = vmatpush.bf16.msrb.mxu1 %v2230_v34  ;;  %1115 = vmatpush.bf16.msra.mxu2 %v2230_v34 }
 0xb3e   :  { %618 = vrot.lane.b32.xlu1 %v617_v36, %s1973_s20  ;;  %v166_v36 = vadd.f32 %v2057_v5, %v2178_v39 }
 0xbb0   :  { %v619_v1 = vpop.permute.xlu1 %618 }
 0xbb1   :  { %1672 = vmatmul.msk.bf16.vlgmr.msrb.gmra.mxu0 %vm209_vm1, %v619_v1 }
 0xc2e   :  { %v632_v48 = vpop.f32.mrf.mxu0 }
 0xc2f   :  { %v633_v49 = vadd.f32 %v632_v48, %v161_v46 }
 0xc31   :  { %1838 = vtanh.f32 %v633_v49  ;;  %v637_v55 = vmul.f32 0.5, %v633_v49 }
 0xc36   :  { %v634_v51 = vpop.f32.mrf.mxu0 }
 0xc37   :  { %v1839_v52 = vpop.eup %1838  ;;  %v635_v53 = vadd.f32 %v634_v51, %v163_v50 }
 0xc38   :  { %651 = vrot.lane.b32.xlu2 %v1839_v52, %s1972_s17 }
 0xc39   :  { %1840 = vtanh.f32 %v635_v53  ;;  %v638_v61 = vmul.f32 0.5, %v635_v53 }
 0xc3a   :  { %1842 = vtanh.f32 %v637_v55 }
 0xc3b   :  { %1844 = vtanh.f32 %v638_v61 }
 0xc3f   :  { %v1841_v54 = vpop.eup %1840 }
 0xc40   :  { %653 = vrot.lane.b32.xlu0 %v1841_v54, %s1972_s17  ;;  %v1843_v56 = vpop.eup %1842 }
 0xc41   :  { %v641_v57 = vmul.f32 0.5, %v1843_v56  ;;  %v1845_v63 = vpop.eup %1844 }
 0xc42   :  { %v642_v2 = vmul.f32 0.5, %v1845_v63 }
 0xc43   :  { %v643_v58 = vadd.f32 0.5, %v641_v57 }
 0xc44   :  { %v644_v6 = vadd.f32 0.5, %v642_v2 }
 0xc45   :  { %v647_v9 = vmul.f32 %v643_v58, %v585_v24 }
 0xc46   :  { %v648_v12 = vmul.f32 %v644_v6, %v2153_v18  ;;  %v1766_v18 = vld [vmem:[%s2467_s4] sm:$0xff] }
 0xc47   :  { %965 = vmatpush.bf16.msra.mxu3 %v1766_v18 }
 0xc92   :  { %v652_v59 = vpop.permute.xlu2 %651 }
 0xc93   :  { %v657_v60 = vmul.f32 %v652_v59, %v643_v58 }
 0xc95   :  { %661 = vrot.lane.b32.xlu1 %v657_v60, %s1972_s17 }
 0xcb2   :  { %v654_v7 = vpop.permute.xlu0 %653 }
 0xcb3   :  { %v658_v8 = vmul.f32 %v654_v7, %v644_v6 }
 0xcb5   :  { %663 = vrot.lane.b32.xlu2 %v658_v8, %s1972_s17 }
 0xd07   :  { %v662_v10 = vpop.permute.xlu1 %661 }
 0xd08   :  { %v2192_v11 = vadd.f32 %v662_v10, %v647_v9 }
 0xd0a   :  { %1846 = vtanh.f32 %v2192_v11 }
 0xd0f   :  { %v664_v13 = vpop.permute.xlu2 %663 }
 0xd10   :  { %v1847_v14 = vpop.eup %1846  ;;  %v2196_v15 = vadd.f32 %v664_v13, %v648_v12 }
 0xd11   :  { %673 = vrot.lane.b32.xlu0 %v1847_v14, %s1972_s17 }
 0xd12   :  { %1848 = vtanh.f32 %v2196_v15 }
 0xd18   :  { %v1849_v16 = vpop.eup %1848 }
 0xd19   :  { %675 = vrot.lane.b32.xlu1 %v1849_v16, %s1972_s17  ;;  %275 = vrot.lane.b32.xlu0 %v2074_v40, %s1973_s20 }
 0xd21   :  { %277 = vrot.lane.b32.xlu1 %v2076_v42, %s1973_s20 }
 0xd83   :  { %v674_v19 = vpop.permute.xlu0 %673 }
 0xd84   :  { %v679_v20 = vmul.f32 %v674_v19, %v643_v58 }
 0xd86   :  { %v2211_v25 = vpack.c.bf16 %v679_v20, %v679_v20 }
 0xd88   :  { %v697_v26 = vunpack.c.l.b16 %v2211_v25 }
 0xd8b   :  { %v676_v22 = vpop.permute.xlu1 %675  ;;  %v276_v24 = vpop.permute.xlu0 %275 }
 0xd8c   :  { %v680_v40 = vmul.f32 %v676_v22, %v644_v6  ;;  %282 = vst.msk [vmem:[#allocation3] sm:$0xf] %vm281_vm2, %v276_v24 }
 0xd8e   :  { %v2214_v42 = vpack.c.bf16 %v680_v40, %v680_v40 }
 0xd90   :  { %v698_v27 = vunpack.c.l.b16 %v2214_v42 }
 0xd92   :  { %v699_v28 = vpack.c.b16 %v698_v27, %v697_v26 }
 0xd93   :  { %v278_v29 = vpop.permute.xlu1 %277 }
 0xd94   :  { %283 = vst.msk [vmem:[#allocation3 + $0x4] sm:$0xf] %vm281_vm2, %v278_v29  ;;  %700 = vrot.lane.b32.xlu2 %v699_v28, %s1973_s20 }
 0xd9b   :  { %v1758_v30 = vld [vmem:[#allocation3] sm:$0xff] }
 0xd9c   :  { %1715 = vmatmul.msk.bf16.vlgmr.msra.gmra.mxu3 %vm209_vm1, %v1758_v30 }
 0xdee   :  { %v701_v35 = vpop.permute.xlu2 %700 }
 0xdef   :  { %1673 = vmatmul.msk.bf16.vlgmr.msra.gmra.mxu1 %vm209_vm1, %v701_v35 }
 0xdf0   :  { %1181 = vmatpush.bf16.msra.mxu1 %v2224_v32 }
 0xdf4   :  { %1182 = vmatpush.bf16.msra.mxu1 %v2230_v34 }
 0xdff   :  { %1049 = vmatmul.bf16.vlgmr.msrb.gmra.mxu1 %v1971_v4  ;;  %v2249_v4 = vld [vmem:[%s2468_s6] ss:$0 sm:$0xff] }
 0xe00   :  { %1315 = vmatpush.bf16.msrb.mxu1 %v2224_v32 }
 0xe04   :  { %1316 = vmatpush.bf16.msrb.mxu1 %v2230_v34 }
 0xe1f   :  { %v967_v49 = vpop.f32.mrf.mxu3 }
 0xe20   :  { %v968_v39 = vadd.f32 %v2249_v4, %v967_v49 }
 0xe27   :  { %v969_v41 = vpop.f32.mrf.mxu3 }
 0xe28   :  { %v970_v53 = vadd.f32 %v2249_v4, %v969_v41 }
 0xe6c   :  { %v714_v37 = vpop.f32.mrf.mxu1 }
 0xe6d   :  { %v715_v1 = vadd.f32 %v714_v37, %v166_v36 }
 0xe6f   :  { %1850 = vtanh.f32 %v715_v1  ;;  %v719_v58 = vmul.f32 0.5, %v715_v1 }
 0xe74   :  { %v716_v38 = vpop.f32.mrf.mxu1 }
 0xe75   :  { %v1851_v46 = vpop.eup %1850  ;;  %v717_v48 = vadd.f32 %v716_v38, %v168_v3 }
 0xe76   :  { %733 = vrot.lane.b32.xlu2 %v1851_v46, %s1972_s17 }
 0xe77   :  { %1852 = vtanh.f32 %v717_v48  ;;  %v720_v7 = vmul.f32 0.5, %v717_v48 }
 0xe7c   :  { %v1050_v50 = vpop.f32.mrf.mxu1 }
 0xe7d   :  { %v1853_v51 = vpop.eup %1852  ;;  %v1051_v52 = vadd.f32 %v1050_v50, %v968_v39 }
 0xe7e   :  { %735 = vrot.lane.b32.xlu0 %v1853_v51, %s1972_s17 }
 0xe7f   :  { %1854 = vtanh.f32 %v1051_v52  ;;  %v1055_v10 = vmul.f32 0.5, %v1051_v52 }
 0xe84   :  { %v1052_v54 = vpop.f32.mrf.mxu1 }
 0xe85   :  { %v1855_v55 = vpop.eup %1854  ;;  %v1053_v56 = vadd.f32 %v1052_v54, %v970_v53 }
 0xe86   :  { %1069 = vrot.lane.b32.xlu1 %v1855_v55, %s1972_s17 }
 0xe87   :  { %1856 = vtanh.f32 %v1053_v56  ;;  %v1056_v6 = vmul.f32 0.5, %v1053_v56 }
 0xe88   :  { %1858 = vtanh.f32 %v719_v58 }
 0xe89   :  { %1860 = vtanh.f32 %v1056_v6 }
 0xe8a   :  { %1862 = vtanh.f32 %v720_v7 }
 0xe8b   :  { %1864 = vtanh.f32 %v1055_v10 }
 0xe8d   :  { %v1857_v57 = vpop.eup %1856 }
 0xe8e   :  { %1071 = vrot.lane.b32.xlu2 %v1857_v57, %s1972_s17  ;;  %v1859_v59 = vpop.eup %1858 }
 0xe8f   :  { %v723_v60 = vmul.f32 0.5, %v1859_v59  ;;  %v1861_v8 = vpop.eup %1860 }
 0xe90   :  { %v1060_v9 = vmul.f32 0.5, %v1861_v8  ;;  %v1863_v13 = vpop.eup %1862 }
 0xe91   :  { %v725_v61 = vadd.f32 0.5, %v723_v60  ;;  %v724_v17 = vmul.f32 0.5, %v1863_v13  ;;  %v1865_v19 = vpop.eup %1864 }
 0xe92   :  { %v1062_v12 = vadd.f32 0.5, %v1060_v9  ;;  %v1059_v24 = vmul.f32 0.5, %v1865_v19  ;;  %v171_v9 = vadd.f32 %v2057_v5, %v2182_v43 }
 0xe93   :  { %v726_v18 = vadd.f32 0.5, %v724_v17  ;;  %v729_v28 = vmul.f32 %v725_v61, %v2192_v11 }
 0xe94   :  { %v1061_v40 = vadd.f32 0.5, %v1059_v24  ;;  %v1066_v3 = vmul.f32 0.0, %v1062_v12 }
 0xe95   :  { %v730_v11 = vmul.f32 %v726_v18, %v2196_v15 }
 0xe96   :  { %v1065_v36 = vmul.f32 0.0, %v1061_v40 }
 0xed0   :  { %v734_v63 = vpop.permute.xlu2 %733 }
 0xed1   :  { %v739_v2 = vmul.f32 %v734_v63, %v725_v61 }
 0xed3   :  { %743 = vrot.lane.b32.xlu0 %v739_v2, %s1972_s17 }
 0xee8   :  { %v1072_v14 = vpop.permute.xlu2 %1071 }
 0xee9   :  { %v1076_v16 = vmul.f32 %v1072_v14, %v1062_v12 }
 0xeeb   :  { %1081 = vrot.lane.b32.xlu0 %v1076_v16, %s1972_s17 }
 0xef0   :  { %v736_v20 = vpop.permute.xlu0 %735 }
 0xef1   :  { %v740_v22 = vmul.f32 %v736_v20, %v726_v18 }
 0xef3   :  { %745 = vrot.lane.b32.xlu1 %v740_v22, %s1972_s17 }
 0xef8   :  { %v1070_v26 = vpop.permute.xlu1 %1069 }
 0xef9   :  { %v1075_v27 = vmul.f32 %v1070_v26, %v1061_v40 }
 0xefb   :  { %1079 = vrot.lane.b32.xlu2 %v1075_v27, %s1972_s17 }
 0xf45   :  { %v744_v29 = vpop.permute.xlu0 %743 }
 0xf46   :  { %v2261_v30 = vadd.f32 %v744_v29, %v729_v28 }
 0xf48   :  { %1866 = vtanh.f32 %v2261_v30 }
 0xf4e   :  { %v1867_v35 = vpop.eup %1866 }
 0xf4f   :  { %755 = vrot.lane.b32.xlu1 %v1867_v35, %s1972_s17 }
 0xf55   :  { %v1080_v37 = vpop.permute.xlu2 %1079 }
 0xf56   :  { %v2265_v1 = vadd.f32 %v1080_v37, %v1065_v36 }
 0xf58   :  { %1868 = vtanh.f32 %v2265_v1 }
 0xf5d   :  { %v1082_v38 = vpop.permute.xlu0 %1081 }
 0xf5e   :  { %v1869_v46 = vpop.eup %1868  ;;  %v2268_v48 = vadd.f32 %v1082_v38, %v1066_v3 }
 0xf5f   :  { %1091 = vrot.lane.b32.xlu0 %v1869_v46, %s1972_s17 }
 0xf60   :  { %1870 = vtanh.f32 %v2268_v48 }
 0xf65   :  { %v746_v49 = vpop.permute.xlu1 %745 }
 0xf66   :  { %v1871_v39 = vpop.eup %1870  ;;  %v2273_v50 = vadd.f32 %v746_v49, %v730_v11 }
 0xf67   :  { %357 = vrot.lane.b32.xlu0 %v2097_v21, %s1973_s20  ;;  %1093 = vrot.lane.b32.xlu1 %v1871_v39, %s1972_s17 }
 0xf68   :  { %1872 = vtanh.f32 %v2273_v50 }
 0xf6e   :  { %v1873_v51 = vpop.eup %1872 }
 0xf6f   :  { %757 = vrot.lane.b32.xlu2 %v1873_v51, %s1972_s17  ;;  %359 = vrot.lane.b32.xlu1 %v2099_v23, %s1973_s20 }
 0xfc1   :  { %v756_v52 = vpop.permute.xlu1 %755 }
 0xfc2   :  { %v761_v41 = vmul.f32 %v756_v52, %v725_v61 }
 0xfc4   :  { %v2282_v53 = vpack.c.bf16 %v761_v41, %v761_v41 }
 0xfc6   :  { %v779_v21 = vunpack.c.l.b16 %v2282_v53 }
 0xfc9   :  { %v758_v15 = vpop.permute.xlu2 %757 }
 0xfca   :  { %v762_v54 = vmul.f32 %v758_v15, %v726_v18 }
 0xfcc   :  { %v2284_v55 = vpack.c.bf16 %v762_v54, %v762_v54 }
 0xfce   :  { %v780_v56 = vunpack.c.l.b16 %v2284_v55 }
 0xfd0   :  { %v781_v57 = vpack.c.b16 %v780_v56, %v779_v21 }
 0xfd1   :  { %v1092_v58 = vpop.permute.xlu0 %1091 }
 0xfd2   :  { %782 = vrot.lane.b32.xlu2 %v781_v57, %s1973_s20  ;;  %v1097_v63 = vmul.f32 %v1092_v58, %v1061_v40 }
 0xfd9   :  { %v1094_v59 = vpop.permute.xlu1 %1093  ;;  %v358_v60 = vpop.permute.xlu0 %357 }
 0xfda   :  { %v1098_v23 = vmul.f32 %v1094_v59, %v1062_v12  ;;  %364 = vst.msk [vmem:[#allocation3 + $0x8] sm:$0xf] %vm281_vm2, %v358_v60 }
 0xfdc   :  { %v1099_v61 = vpack.c.bf16 %v1098_v23, %v1097_v63 }
 0xfde   :  { %1103 = vrot.lane.b32.xlu2 %v1099_v61, %s1973_s20 }
 0xfe1   :  { %v360_v2 = vpop.permute.xlu1 %359 }
 0xfe2   :  { %365 = vst.msk [vmem:[#allocation3 + $0xc] sm:$0xf] %vm281_vm2, %v360_v2 }
 0xfe9   :  { %v1759_v6 = vld [vmem:[#allocation3 + $0x8] sm:$0xff] }
 0xfea   :  { %1716 = vmatmul.msk.bf16.gmra.mxu3 %vm209_vm1, %v1759_v6 }
0x102c   :  { %v783_v7 = vpop.permute.xlu2 %782 }
0x102d   :  { %1674 = vmatmul.msk.bf16.vlgmr.msrb.gmra.mxu2 %vm209_vm1, %v783_v7 }
0x102e   :  { %1248 = vmatpush.bf16.msrb.mxu2 %v2224_v32 }
0x1032   :  { %1249 = vmatpush.bf16.msrb.mxu2 %v2230_v34 }
0x1038   :  { %v1104_v8 = vpop.permute.xlu2 %1103 }
0x103d   :  { %1731 = vmatmul.msk.bf16.vlgmr.msra.gmra.mxu2 %vm209_vm1, %v1104_v8 }
0x103e   :  { %1382 = vmatpush.bf16.msra.mxu2 %v2224_v32 }
0x1042   :  { %1383 = vmatpush.bf16.msra.mxu2 %v2230_v34 }
0x106d   :  { %v972_v14 = vpop.f32.mrf.mxu3 }
0x106e   :  { %v973_v16 = vadd.f32 %v2249_v4, %v972_v14 }
0x1075   :  { %v974_v19 = vpop.f32.mrf.mxu3 }
0x1076   :  { %v975_v20 = vadd.f32 %v2249_v4, %v974_v19 }
0x10b0   :  { %v796_v10 = vpop.f32.mrf.mxu2 }
0x10b1   :  { %v2301_v12 = vadd.f32 %v796_v10, %v171_v9 }
0x10b8   :  { %v2303_v13 = vpop.f32.mrf.mxu2 }
0x10c0   :  { %v1117_v17 = vpop.f32.mrf.mxu2 }
0x10c1   :  { %v1118_v18 = vadd.f32 %v1117_v17, %v973_v16 }
0x10c3   :  { %1874 = vtanh.f32 %v1118_v18  ;;  %v1122_v43 = vmul.f32 0.5, %v1118_v18 }
0x10c8   :  { %v1119_v22 = vpop.f32.mrf.mxu2 }
0x10c9   :  { %v1875_v24 = vpop.eup %1874  ;;  %v1120_v40 = vadd.f32 %v1119_v22, %v975_v20 }
0x10ca   :  { %1136 = vrot.lane.b32.xlu0 %v1875_v24, %s1972_s17 }
0x10cb   :  { %1876 = vtanh.f32 %v1120_v40  ;;  %v1123_v26 = vmul.f32 0.5, %v1120_v40 }
0x10cc   :  { %1878 = vtanh.f32 %v1122_v43 }
0x10cd   :  { %1880 = vtanh.f32 %v1123_v26 }
0x10d1   :  { %v1877_v5 = vpop.eup %1876 }
0x10d2   :  { %1138 = vrot.lane.b32.xlu1 %v1877_v5, %s1972_s17  ;;  %v1879_v27 = vpop.eup %1878 }
0x10d3   :  { %v1126_v28 = vmul.f32 0.5, %v1879_v27  ;;  %v1881_v35 = vpop.eup %1880 }
0x10d4   :  { %v1127_v3 = vmul.f32 0.5, %v1881_v35 }
0x10d5   :  { %v1128_v29 = vadd.f32 0.5, %v1126_v28 }
0x10d6   :  { %v1129_v38 = vadd.f32 0.5, %v1127_v3 }
0x10d7   :  { %v1132_v49 = vmul.f32 %v1128_v29, %v2265_v1 }
0x10d8   :  { %v1133_v41 = vmul.f32 %v1129_v38, %v2268_v48 }
0x113c   :  { %v1137_v36 = vpop.permute.xlu0 %1136 }
0x113d   :  { %v1142_v37 = vmul.f32 %v1137_v36, %v1128_v29 }
0x113f   :  { %1146 = vrot.lane.b32.xlu2 %v1142_v37, %s1972_s17 }
0x1144   :  { %v1139_v46 = vpop.permute.xlu1 %1138 }
0x1145   :  { %v1143_v11 = vmul.f32 %v1139_v46, %v1129_v38 }
0x1147   :  { %1148 = vrot.lane.b32.xlu0 %v1143_v11, %s1972_s17 }
0x114f   :  { %439 = vrot.lane.b32.xlu0 %v2119_v62, %s1973_s20 }
0x1199   :  { %v1147_v39 = vpop.permute.xlu2 %1146 }
0x119a   :  { %v1152_v51 = vadd.f32 %v1147_v39, %v1132_v49 }
0x119c   :  { %1882 = vtanh.f32 %v1152_v51 }
0x11a2   :  { %v1883_v52 = vpop.eup %1882 }
0x11a3   :  { %1158 = vrot.lane.b32.xlu1 %v1883_v52, %s1972_s17 }
0x11ab   :  { %441 = vrot.lane.b32.xlu1 %v2121_v0, %s1973_s20 }
0x11b9   :  { %v1149_v15 = vpop.permute.xlu0 %1148 }
0x11ba   :  { %v1153_v54 = vadd.f32 %v1149_v15, %v1133_v41 }
0x11bc   :  { %1884 = vtanh.f32 %v1153_v54 }
0x11c1   :  { %v440_v21 = vpop.permute.xlu0 %439 }
0x11c2   :  { %v1885_v56 = vpop.eup %1884  ;;  %446 = vst.msk [vmem:[#allocation3 + $0x10] sm:$0xf] %vm281_vm2, %v440_v21 }
0x11c3   :  { %1160 = vrot.lane.b32.xlu2 %v1885_v56, %s1972_s17 }
0x1215   :  { %v1159_v62 = vpop.permute.xlu1 %1158 }
0x1216   :  { %v1164_v58 = vmul.f32 %v1159_v62, %v1128_v29 }
0x121d   :  { %v1161_v1 = vpop.permute.xlu2 %1160  ;;  %v442_v57 = vpop.permute.xlu1 %441 }
0x121e   :  { %v1165_v59 = vmul.f32 %v1161_v1, %v1129_v38  ;;  %447 = vst.msk [vmem:[#allocation3 + $0x14] sm:$0xf] %vm281_vm2, %v442_v57 }
0x1220   :  { %v1166_v60 = vpack.c.bf16 %v1165_v59, %v1164_v58 }
0x1222   :  { %1170 = vrot.lane.b32.xlu2 %v1166_v60, %s1973_s20 }
0x1225   :  { %v1760_v0 = vld [vmem:[#allocation3 + $0x10] sm:$0xff] }
0x1226   :  { %1717 = vmatmul.msk.bf16.gmra.mxu3 %vm209_vm1, %v1760_v0 }
0x127c   :  { %v1171_v48 = vpop.permute.xlu2 %1170 }
0x127d   :  { %1732 = vmatmul.msk.bf16.vlgmr.msra.gmra.mxu1 %vm209_vm1, %v1171_v48 }
0x127e   :  { %1449 = vmatpush.bf16.msra.mxu1 %v2224_v32 }
0x1282   :  { %1450 = vmatpush.bf16.msra.mxu1 %v2230_v34 }
0x12a9   :  { %v977_v63 = vpop.f32.mrf.mxu3 }
0x12aa   :  { %v978_v23 = vadd.f32 %v2249_v4, %v977_v63 }
0x12b1   :  { %v979_v6 = vpop.f32.mrf.mxu3 }
0x12b2   :  { %v980_v7 = vadd.f32 %v2249_v4, %v979_v6 }
0x12fa   :  { %v1184_v61 = vpop.f32.mrf.mxu1 }
0x12fb   :  { %v1185_v2 = vadd.f32 %v1184_v61, %v978_v23 }
0x12fd   :  { %1886 = vtanh.f32 %v1185_v2  ;;  %v1189_v16 = vmul.f32 0.5, %v1185_v2 }
0x1302   :  { %v1186_v8 = vpop.f32.mrf.mxu1 }
0x1303   :  { %v1887_v9 = vpop.eup %1886  ;;  %v1187_v10 = vadd.f32 %v1186_v8, %v980_v7 }
0x1304   :  { %1203 = vrot.lane.b32.xlu0 %v1887_v9, %s1972_s17 }
0x1305   :  { %1888 = vtanh.f32 %v1187_v10  ;;  %v1190_v17 = vmul.f32 0.5, %v1187_v10 }
0x1306   :  { %1890 = vtanh.f32 %v1189_v16 }
0x1307   :  { %1892 = vtanh.f32 %v1190_v17 }
0x130b   :  { %v1889_v14 = vpop.eup %1888 }
0x130c   :  { %1205 = vrot.lane.b32.xlu1 %v1889_v14, %s1972_s17  ;;  %v1891_v18 = vpop.eup %1890 }
0x130d   :  { %v1193_v19 = vmul.f32 0.5, %v1891_v18  ;;  %v1893_v22 = vpop.eup %1892 }
0x130e   :  { %v1194_v5 = vmul.f32 0.5, %v1893_v22 }
0x130f   :  { %v1195_v20 = vadd.f32 0.5, %v1193_v19 }
0x1310   :  { %v1196_v43 = vadd.f32 0.5, %v1194_v5 }
0x1311   :  { %v1199_v28 = vmul.f32 %v1195_v20, %v1152_v51 }
0x1312   :  { %v1200_v37 = vmul.f32 %v1196_v43, %v1153_v54 }
0x1376   :  { %v1204_v24 = vpop.permute.xlu0 %1203 }
0x1377   :  { %v1209_v40 = vmul.f32 %v1204_v24, %v1195_v20 }
0x1379   :  { %1213 = vrot.lane.b32.xlu2 %v1209_v40, %s1972_s17 }
0x137e   :  { %v1206_v26 = vpop.permute.xlu1 %1205 }
0x137f   :  { %v1210_v27 = vmul.f32 %v1206_v26, %v1196_v43 }
0x1381   :  { %1215 = vrot.lane.b32.xlu0 %v1210_v27, %s1972_s17 }
0x1389   :  { %521 = vrot.lane.b32.xlu0 %v2139_v45, %s1973_s20 }
0x13d3   :  { %v1214_v29 = vpop.permute.xlu2 %1213 }
0x13d4   :  { %v1219_v35 = vadd.f32 %v1214_v29, %v1199_v28 }
0x13d6   :  { %1894 = vtanh.f32 %v1219_v35 }
0x13dc   :  { %v1895_v36 = vpop.eup %1894 }
0x13dd   :  { %1225 = vrot.lane.b32.xlu1 %v1895_v36, %s1972_s17 }
0x13e5   :  { %523 = vrot.lane.b32.xlu1 %v2141_v47, %s1973_s20 }
0x13f3   :  { %v1216_v3 = vpop.permute.xlu0 %1215 }
0x13f4   :  { %v1220_v38 = vadd.f32 %v1216_v3, %v1200_v37 }
0x13f6   :  { %1896 = vtanh.f32 %v1220_v38 }
0x13fb   :  { %v522_v46 = vpop.permute.xlu0 %521 }
0x13fc   :  { %v1897_v11 = vpop.eup %1896  ;;  %528 = vst.msk [vmem:[#allocation3 + $0x18] sm:$0xf] %vm281_vm2, %v522_v46 }
0x13fd   :  { %1227 = vrot.lane.b32.xlu2 %v1897_v11, %s1972_s17 }
0x144f   :  { %v1226_v45 = vpop.permute.xlu1 %1225 }
0x1450   :  { %v1231_v51 = vmul.f32 %v1226_v45, %v1195_v20 }
0x1457   :  { %v1228_v49 = vpop.permute.xlu2 %1227  ;;  %v524_v39 = vpop.permute.xlu1 %523 }
0x1458   :  { %v1232_v52 = vmul.f32 %v1228_v49, %v1196_v43  ;;  %529 = vst.msk [vmem:[#allocation3 + $0x1c] sm:$0xf] %vm281_vm2, %v524_v39 }
0x145a   :  { %v1233_v41 = vpack.c.bf16 %v1232_v52, %v1231_v51 }
0x145c   :  { %1237 = vrot.lane.b32.xlu2 %v1233_v41, %s1973_s20 }
0x145f   :  { %v1761_v47 = vld [vmem:[#allocation3 + $0x18] sm:$0xff] }
0x1460   :  { %1718 = vmatmul.msk.bf16.gmra.mxu3 %vm209_vm1, %v1761_v47 }
0x14b6   :  { %v1238_v15 = vpop.permute.xlu2 %1237 }
0x14b7   :  { %1733 = vmatmul.msk.bf16.vlgmr.msrb.gmra.mxu2 %vm209_vm1, %v1238_v15 }
0x14b8   :  { %1516 = vmatpush.bf16.msrb.mxu2 %v2224_v32 }
0x14bc   :  { %1517 = vmatpush.bf16.msrb.mxu2 %v2230_v34 }
0x14e3   :  { %v982_v54 = vpop.f32.mrf.mxu3 }
0x14e4   :  { %v983_v21 = vadd.f32 %v2249_v4, %v982_v54 }
0x14eb   :  { %v984_v1 = vpop.f32.mrf.mxu3 }
0x14ec   :  { %v985_v57 = vadd.f32 %v2249_v4, %v984_v1 }
0x153a   :  { %v1251_v56 = vpop.f32.mrf.mxu2 }
0x153b   :  { %v1252_v62 = vadd.f32 %v1251_v56, %v983_v21 }
0x153d   :  { %1898 = vtanh.f32 %v1252_v62  ;;  %v1256_v32 = vmul.f32 0.5, %v1252_v62 }
0x1542   :  { %v1253_v58 = vpop.f32.mrf.mxu2 }
0x1543   :  { %v1899_v59 = vpop.eup %1898  ;;  %v1254_v60 = vadd.f32 %v1253_v58, %v985_v57 }
0x1544   :  { %1270 = vrot.lane.b32.xlu0 %v1899_v59, %s1972_s17 }
0x1545   :  { %1900 = vtanh.f32 %v1254_v60  ;;  %v1257_v34 = vmul.f32 0.5, %v1254_v60 }
0x1546   :  { %1902 = vtanh.f32 %v1256_v32 }
0x1547   :  { %1904 = vtanh.f32 %v1257_v34 }
0x154b   :  { %v1901_v0 = vpop.eup %1900 }
0x154c   :  { %1272 = vrot.lane.b32.xlu1 %v1901_v0, %s1972_s17  ;;  %v1903_v48 = vpop.eup %1902 }
0x154d   :  { %v1260_v63 = vmul.f32 0.5, %v1903_v48  ;;  %v1905_v61 = vpop.eup %1904 }
0x154e   :  { %v1261_v7 = vmul.f32 0.5, %v1905_v61 }
0x154f   :  { %v1262_v23 = vadd.f32 0.5, %v1260_v63 }
0x1550   :  { %v1263_v8 = vadd.f32 0.5, %v1261_v7 }
0x1551   :  { %v1266_v14 = vmul.f32 %v1262_v23, %v1219_v35 }
0x1552   :  { %v1267_v19 = vmul.f32 %v1263_v8, %v1220_v38 }
0x15b6   :  { %v1271_v2 = vpop.permute.xlu0 %1270 }
0x15b7   :  { %v1276_v6 = vmul.f32 %v1271_v2, %v1262_v23 }
0x15b9   :  { %1280 = vrot.lane.b32.xlu2 %v1276_v6, %s1972_s17 }
0x15be   :  { %v1273_v9 = vpop.permute.xlu1 %1272 }
0x15bf   :  { %v1277_v10 = vmul.f32 %v1273_v9, %v1263_v8 }
0x15c1   :  { %1282 = vrot.lane.b32.xlu0 %v1277_v10, %s1972_s17 }
0x15c9   :  { %603 = vrot.lane.b32.xlu0 %v2166_v31, %s1973_s20 }
0x1613   :  { %v1281_v16 = vpop.permute.xlu2 %1280 }
0x1614   :  { %v1286_v17 = vadd.f32 %v1281_v16, %v1266_v14 }
0x1616   :  { %1906 = vtanh.f32 %v1286_v17 }
0x161c   :  { %v1907_v18 = vpop.eup %1906 }
0x161d   :  { %1292 = vrot.lane.b32.xlu1 %v1907_v18, %s1972_s17 }
0x1625   :  { %605 = vrot.lane.b32.xlu1 %v2168_v33, %s1973_s20 }
0x1633   :  { %v1283_v20 = vpop.permute.xlu0 %1282 }
0x1634   :  { %v1287_v22 = vadd.f32 %v1283_v20, %v1267_v19 }
0x1636   :  { %1908 = vtanh.f32 %v1287_v22 }
0x163b   :  { %v604_v24 = vpop.permute.xlu0 %603 }
0x163c   :  { %v1909_v40 = vpop.eup %1908  ;;  %610 = vst.msk [vmem:[#allocation3 + $0x20] sm:$0xf] %vm281_vm2, %v604_v24 }
0x163d   :  { %1294 = vrot.lane.b32.xlu2 %v1909_v40, %s1972_s17 }
0x168f   :  { %v1293_v31 = vpop.permute.xlu1 %1292 }
0x1690   :  { %v1298_v26 = vmul.f32 %v1293_v31, %v1262_v23 }
0x1697   :  { %v1295_v5 = vpop.permute.xlu2 %1294  ;;  %v606_v43 = vpop.permute.xlu1 %605 }
0x1698   :  { %v1299_v27 = vmul.f32 %v1295_v5, %v1263_v8  ;;  %611 = vst.msk [vmem:[#allocation3 + $0x24] sm:$0xf] %vm281_vm2, %v606_v43 }
0x169a   :  { %v1300_v28 = vpack.c.bf16 %v1299_v27, %v1298_v26 }
0x169c   :  { %1304 = vrot.lane.b32.xlu2 %v1300_v28, %s1973_s20 }
0x169f   :  { %v1762_v33 = vld [vmem:[#allocation3 + $0x20] sm:$0xff] }
0x16a0   :  { %1719 = vmatmul.msk.bf16.gmra.mxu3 %vm209_vm1, %v1762_v33 }
0x16f6   :  { %v1305_v29 = vpop.permute.xlu2 %1304 }
0x16f7   :  { %1734 = vmatmul.msk.bf16.vlgmr.msrb.gmra.mxu1 %vm209_vm1, %v1305_v29 }
0x1723   :  { %v987_v35 = vpop.f32.mrf.mxu3 }
0x1724   :  { %v988_v36 = vadd.f32 %v2249_v4, %v987_v35 }
0x172b   :  { %v989_v38 = vpop.f32.mrf.mxu3 }
0x172c   :  { %v990_v46 = vadd.f32 %v2249_v4, %v989_v38 }
0x1774   :  { %v1318_v37 = vpop.f32.mrf.mxu1 }
0x1775   :  { %v1319_v3 = vadd.f32 %v1318_v37, %v988_v36 }
0x1777   :  { %1910 = vtanh.f32 %v1319_v3  ;;  %v1323_v51 = vmul.f32 0.5, %v1319_v3 }
0x177c   :  { %v1320_v11 = vpop.f32.mrf.mxu1 }
0x177d   :  { %v1911_v45 = vpop.eup %1910  ;;  %v1321_v49 = vadd.f32 %v1320_v11, %v990_v46 }
0x177e   :  { %1337 = vrot.lane.b32.xlu0 %v1911_v45, %s1972_s17 }
0x177f   :  { %1912 = vtanh.f32 %v1321_v49  ;;  %v1324_v52 = vmul.f32 0.5, %v1321_v49 }
0x1780   :  { %1914 = vtanh.f32 %v1323_v51  ;;  %v1970_v51 = vld [vmem:[%s2466_s3] ss:$0 sm:$0xff] }
0x1781   :  { %1916 = vtanh.f32 %v1324_v52 }
0x1785   :  { %v1913_v39 = vpop.eup %1912 }
0x1786   :  { %1339 = vrot.lane.b32.xlu1 %v1913_v39, %s1972_s17  ;;  %v1915_v41 = vpop.eup %1914 }
0x1787   :  { %v1327_v47 = vmul.f32 0.5, %v1915_v41  ;;  %v1917_v54 = vpop.eup %1916 }
0x1788   :  { %v1328_v62 = vmul.f32 0.5, %v1917_v54 }
0x1789   :  { %v1329_v15 = vadd.f32 0.5, %v1327_v47  ;;  %v801_v47 = vmul.f32 0.5, %v2301_v12 }
0x178a   :  { %v1330_v1 = vadd.f32 0.5, %v1328_v62 }
0x178b   :  { %v1333_v59 = vmul.f32 %v1329_v15, %v1286_v17 }
0x178c   :  { %v1334_v34 = vmul.f32 %v1330_v1, %v1287_v22 }
0x17f0   :  { %v1338_v21 = vpop.permute.xlu0 %1337 }
0x17f1   :  { %v1343_v56 = vmul.f32 %v1338_v21, %v1329_v15 }
0x17f3   :  { %1347 = vrot.lane.b32.xlu2 %v1343_v56, %s1972_s17 }
0x17f8   :  { %v1340_v57 = vpop.permute.xlu1 %1339 }
0x17f9   :  { %v1344_v58 = vmul.f32 %v1340_v57, %v1330_v1 }
0x17fb   :  { %1349 = vrot.lane.b32.xlu0 %v1344_v58, %s1972_s17 }
0x1803   :  { %685 = vrot.lane.b32.xlu0 %v2211_v25, %s1973_s20 }
0x184d   :  { %v1348_v60 = vpop.permute.xlu2 %1347 }
0x184e   :  { %v1353_v0 = vadd.f32 %v1348_v60, %v1333_v59 }
0x1850   :  { %1918 = vtanh.f32 %v1353_v0 }
0x1856   :  { %v1919_v32 = vpop.eup %1918 }
0x1857   :  { %1359 = vrot.lane.b32.xlu1 %v1919_v32, %s1972_s17 }
0x185f   :  { %687 = vrot.lane.b32.xlu1 %v2214_v42, %s1973_s20 }
0x186d   :  { %v1350_v48 = vpop.permute.xlu0 %1349 }
0x186e   :  { %v2373_v63 = vadd.f32 %v1350_v48, %v1334_v34 }
0x1870   :  { %1920 = vtanh.f32 %v2373_v63 }
0x1875   :  { %v686_v23 = vpop.permute.xlu0 %685 }
0x1876   :  { %v1921_v61 = vpop.eup %1920  ;;  %692 = vst.msk [vmem:[#allocation3 + $0x28] sm:$0xf] %vm281_vm2, %v686_v23 }
0x1877   :  { %1361 = vrot.lane.b32.xlu2 %v1921_v61, %s1972_s17 }
0x18c9   :  { %v1360_v25 = vpop.permute.xlu1 %1359 }
0x18ca   :  { %v1365_v7 = vmul.f32 %v1360_v25, %v1329_v15 }
0x18d1   :  { %v1362_v2 = vpop.permute.xlu2 %1361  ;;  %v688_v6 = vpop.permute.xlu1 %687 }
0x18d2   :  { %v1366_v8 = vmul.f32 %v1362_v2, %v1330_v1  ;;  %693 = vst.msk [vmem:[#allocation3 + $0x2c] sm:$0xf] %vm281_vm2, %v688_v6 }
0x18d4   :  { %v1367_v42 = vpack.c.bf16 %v1366_v8, %v1365_v7 }
0x18d6   :  { %1371 = vrot.lane.b32.xlu2 %v1367_v42, %s1973_s20 }
0x18d9   :  { %v1763_v9 = vld [vmem:[#allocation3 + $0x28] sm:$0xff] }
0x18da   :  { %1720 = vmatmul.msk.bf16.gmra.mxu3 %vm209_vm1, %v1763_v9 }
0x1930   :  { %v1372_v10 = vpop.permute.xlu2 %1371 }
0x1931   :  { %1735 = vmatmul.msk.bf16.vlgmr.msra.gmra.mxu2 %vm209_vm1, %v1372_v10 }
0x195d   :  { %v992_v14 = vpop.f32.mrf.mxu3 }
0x195e   :  { %v993_v16 = vadd.f32 %v2249_v4, %v992_v14 }
0x1965   :  { %v994_v19 = vpop.f32.mrf.mxu3 }
0x1966   :  { %v995_v20 = vadd.f32 %v2249_v4, %v994_v19 }
0x19b4   :  { %v1385_v17 = vpop.f32.mrf.mxu2 }
0x19b5   :  { %v1386_v18 = vadd.f32 %v1385_v17, %v993_v16 }
0x19b7   :  { %1922 = vtanh.f32 %v1386_v18  ;;  %v1390_v5 = vmul.f32 0.5, %v1386_v18 }
0x19bc   :  { %v1387_v22 = vpop.f32.mrf.mxu2 }
0x19bd   :  { %v1923_v24 = vpop.eup %1922  ;;  %v1388_v40 = vadd.f32 %v1387_v22, %v995_v20 }
0x19be   :  { %1404 = vrot.lane.b32.xlu0 %v1923_v24, %s1972_s17 }
0x19bf   :  { %1924 = vtanh.f32 %v1388_v40  ;;  %v1391_v43 = vmul.f32 0.5, %v1388_v40 }
0x19c0   :  { %1926 = vtanh.f32 %v1390_v5 }
0x19c1   :  { %1928 = vtanh.f32 %v1391_v43 }
0x19c2   :  { %1930 = vtanh.f32 %v2301_v12 }
0x19c5   :  { %v1925_v31 = vpop.eup %1924 }
0x19c6   :  { %1406 = vrot.lane.b32.xlu1 %v1925_v31, %s1972_s17  ;;  %v1927_v26 = vpop.eup %1926 }
0x19c7   :  { %v1394_v27 = vmul.f32 0.5, %v1927_v26  ;;  %v1929_v33 = vpop.eup %1928 }
0x19c8   :  { %v1395_v36 = vmul.f32 0.5, %v1929_v33  ;;  %v1931_v46 = vpop.eup %1930 }
0x19c9   :  { %v1396_v28 = vadd.f32 0.5, %v1394_v27 }
0x19ca   :  { %v1397_v37 = vadd.f32 0.5, %v1395_v36 }
0x19cb   :  { %v1400_v11 = vmul.f32 %v1396_v28, %v1353_v0 }
0x19cc   :  { %v1401_v15 = vmul.f32 %v1397_v37, %v2373_v63 }
0x1a30   :  { %v1405_v29 = vpop.permute.xlu0 %1404 }
0x1a31   :  { %v1410_v35 = vmul.f32 %v1405_v29, %v1396_v28 }
0x1a33   :  { %1414 = vrot.lane.b32.xlu2 %v1410_v35, %s1972_s17 }
0x1a38   :  { %v1407_v3 = vpop.permute.xlu1 %1406 }
0x1a39   :  { %v1411_v38 = vmul.f32 %v1407_v3, %v1397_v37 }
0x1a3b   :  { %1416 = vrot.lane.b32.xlu0 %v1411_v38, %s1972_s17 }
0x1a43   :  { %767 = vrot.lane.b32.xlu0 %v2282_v53, %s1973_s20  ;;  %v173_v53 = vadd.f32 %v1970_v51, %v2184_v44 }
0x1a45   :  { %v799_v52 = vadd.f32 %v2303_v13, %v173_v53 }
0x1a47   :  { %v802_v23 = vmul.f32 0.5, %v799_v52 }
0x1a4b   :  { %815 = vrot.lane.b32.xlu0 %v1931_v46, %s1972_s17 }
0x1a8d   :  { %v1415_v45 = vpop.permute.xlu2 %1414 }
0x1a8e   :  { %v2392_v49 = vadd.f32 %v1415_v45, %v1400_v11 }
0x1a90   :  { %1932 = vtanh.f32 %v2392_v49 }
0x1a91   :  { %1934 = vtanh.f32 %v799_v52 }
0x1a92   :  { %1936 = vtanh.f32 %v801_v47 }
0x1a96   :  { %v1933_v39 = vpop.eup %1932 }
0x1a97   :  { %1426 = vrot.lane.b32.xlu1 %v1933_v39, %s1972_s17  ;;  %v1935_v41 = vpop.eup %1934 }
0x1a98   :  { %v1937_v44 = vpop.eup %1936 }
0x1a9f   :  { %769 = vrot.lane.b32.xlu1 %v2284_v55, %s1973_s20  ;;  %v805_v55 = vmul.f32 0.5, %v1937_v44 }
0x1aa1   :  { %v807_v62 = vadd.f32 0.5, %v805_v55 }
0x1aa3   :  { %v811_v18 = vmul.f32 %v807_v62, %v2261_v30 }
0x1aa7   :  { %817 = vrot.lane.b32.xlu1 %v1935_v41, %s1972_s17 }
0x1aad   :  { %v1417_v54 = vpop.permute.xlu0 %1416 }
0x1aae   :  { %v2406_v21 = vadd.f32 %v1417_v54, %v1401_v15 }
0x1ab0   :  { %1938 = vtanh.f32 %v2406_v21 }
0x1ab1   :  { %1940 = vtanh.f32 %v802_v23 }
0x1ab5   :  { %v768_v56 = vpop.permute.xlu0 %767 }
0x1ab6   :  { %v1939_v13 = vpop.eup %1938  ;;  %774 = vst.msk [vmem:[#allocation3 + $0x30] sm:$0xf] %vm281_vm2, %v768_v56 }
0x1ab7   :  { %1428 = vrot.lane.b32.xlu2 %v1939_v13, %s1972_s17  ;;  %v1941_v8 = vpop.eup %1940 }
0x1ab8   :  { %v806_v16 = vmul.f32 0.5, %v1941_v8 }
0x1aba   :  { %v808_v19 = vadd.f32 0.5, %v806_v16 }
0x1abc   :  { %v812_v30 = vmul.f32 %v808_v19, %v2273_v50 }
0x1abd   :  { %v816_v1 = vpop.permute.xlu0 %815 }
0x1abe   :  { %v821_v57 = vmul.f32 %v816_v1, %v807_v62 }
0x1ac0   :  { %825 = vrot.lane.b32.xlu1 %v821_v57, %s1972_s17 }
0x1b09   :  { %v1427_v12 = vpop.permute.xlu1 %1426 }
0x1b0a   :  { %v1432_v60 = vmul.f32 %v1427_v12, %v1396_v28 }
0x1b11   :  { %v1429_v58 = vpop.permute.xlu2 %1428  ;;  %v770_v59 = vpop.permute.xlu1 %769 }
0x1b12   :  { %v1433_v0 = vmul.f32 %v1429_v58, %v1397_v37  ;;  %775 = vst.msk [vmem:[#allocation3 + $0x34] sm:$0xf] %vm281_vm2, %v770_v59 }
0x1b14   :  { %v1434_v32 = vpack.c.bf16 %v1433_v0, %v1432_v60 }
0x1b16   :  { %1438 = vrot.lane.b32.xlu2 %v1434_v32, %s1973_s20 }
0x1b19   :  { %v1764_v34 = vld [vmem:[#allocation3 + $0x30] sm:$0xff]  ;;  %v818_v6 = vpop.permute.xlu1 %817 }
0x1b1a   :  { %1721 = vmatmul.msk.bf16.gmra.mxu3 %vm209_vm1, %v1764_v34  ;;  %v822_v22 = vmul.f32 %v818_v6, %v808_v19 }
0x1b32   :  { %v826_v17 = vpop.permute.xlu1 %825 }
0x1b33   :  { %v831_v20 = vadd.f32 %v826_v17, %v811_v18 }
0x1b70   :  { %v1439_v48 = vpop.permute.xlu2 %1438 }
0x1b71   :  { %1736 = vmatmul.msk.bf16.vlgmr.msra.gmra.mxu1 %vm209_vm1, %v1439_v48 }
0x1b9d   :  { %v997_v63 = vpop.f32.mrf.mxu3 }
0x1b9e   :  { %v998_v61 = vadd.f32 %v2249_v4, %v997_v63 }
0x1ba5   :  { %v999_v7 = vpop.f32.mrf.mxu3 }
0x1ba6   :  { %v1000_v42 = vadd.f32 %v2249_v4, %v999_v7 }
0x1bee   :  { %v1452_v25 = vpop.f32.mrf.mxu1 }
0x1bef   :  { %v1453_v2 = vadd.f32 %v1452_v25, %v998_v61 }
0x1bf1   :  { %1942 = vtanh.f32 %v1453_v2  ;;  %v1457_v31 = vmul.f32 0.5, %v1453_v2 }
0x1bf6   :  { %v1454_v9 = vpop.f32.mrf.mxu1 }
0x1bf7   :  { %v1943_v10 = vpop.eup %1942  ;;  %v1455_v14 = vadd.f32 %v1454_v9, %v1000_v42 }
0x1bf8   :  { %1471 = vrot.lane.b32.xlu2 %v1943_v10, %s1972_s17 }
0x1bf9   :  { %1944 = vtanh.f32 %v1455_v14  ;;  %v1458_v35 = vmul.f32 0.5, %v1455_v14 }
0x1bfa   :  { %1946 = vtanh.f32 %v831_v20 }
0x1bfb   :  { %1948 = vtanh.f32 %v1457_v31 }
0x1bff   :  { %v1945_v24 = vpop.eup %1944 }
0x1c00   :  { %1473 = vrot.lane.b32.xlu0 %v1945_v24, %s1972_s17  ;;  %827 = vrot.lane.b32.xlu2 %v822_v22, %s1972_s17  ;;  %v1947_v40 = vpop.eup %1946 }
0x1c01   :  { %v1949_v5 = vpop.eup %1948 }
0x1c02   :  { %v1461_v43 = vmul.f32 0.5, %v1949_v5 }
0x1c04   :  { %v1463_v26 = vadd.f32 0.5, %v1461_v43 }
0x1c06   :  { %v1467_v50 = vmul.f32 %v1463_v26, %v2392_v49 }
0x1c08   :  { %837 = vrot.lane.b32.xlu2 %v1947_v40, %s1972_s17 }
0x1c52   :  { %v1472_v27 = vpop.permute.xlu2 %1471 }
0x1c53   :  { %v1477_v28 = vmul.f32 %v1472_v27, %v1463_v26 }
0x1c55   :  { %1481 = vrot.lane.b32.xlu0 %v1477_v28, %s1972_s17  ;;  %v1771_v28 = vld [vmem:[%s2470_s7 + $0x8] sm:$0xff] }
0x1c56   :  { %1601 = vmatpush.bf16.msrb.mxu1 %v1771_v28 }
0x1c5a   :  { %v828_v33 = vpop.permute.xlu2 %827 }
0x1c5b   :  { %v832_v29 = vadd.f32 %v828_v33, %v812_v30  ;;  %v1770_v30 = vld [vmem:[%s2470_s7] sm:$0xff] }
0x1c5c   :  { %1602 = vmatpush.bf16.msrb.mxu1 %v1770_v30 }
0x1c5d   :  { %1950 = vtanh.f32 %v832_v29 }
0x1c5e   :  { %1952 = vtanh.f32 %v1458_v35 }
0x1c62   :  { %v838_v37 = vpop.permute.xlu2 %837 }
0x1c63   :  { %v1951_v36 = vpop.eup %1950  ;;  %v843_v3 = vmul.f32 %v838_v37, %v807_v62 }
0x1c64   :  { %839 = vrot.lane.b32.xlu0 %v1951_v36, %s1972_s17  ;;  %v1953_v38 = vpop.eup %1952 }
0x1c65   :  { %v845_v46 = vpack.c.bf16 %v843_v3, %v843_v3  ;;  %v1462_v11 = vmul.f32 0.5, %v1953_v38  ;;  %v1777_v38 = vld [vmem:[%s2471_s8] ss:$0 sm:$0xff] }
0x1c67   :  { %v1464_v45 = vadd.f32 0.5, %v1462_v11 }
0x1c69   :  { %v1468_v56 = vmul.f32 %v1464_v45, %v2406_v21 }
0x1c6c   :  { %849 = vrot.lane.b32.xlu0 %v845_v46, %s1973_s20 }
0x1c72   :  { %v1474_v39 = vpop.permute.xlu0 %1473 }
0x1c73   :  { %v1478_v51 = vmul.f32 %v1474_v39, %v1464_v45 }
0x1c75   :  { %1483 = vrot.lane.b32.xlu1 %v1478_v51, %s1972_s17 }
0x1cc7   :  { %v1482_v53 = vpop.permute.xlu0 %1481 }
0x1cc8   :  { %v1487_v52 = vadd.f32 %v1482_v53, %v1467_v50 }
0x1cca   :  { %1954 = vtanh.f32 %v1487_v52 }
0x1cd0   :  { %v1955_v41 = vpop.eup %1954 }
0x1cd1   :  { %1493 = vrot.lane.b32.xlu1 %v1955_v41, %s1972_s17 }
0x1cd6   :  { %v840_v47 = vpop.permute.xlu0 %839 }
0x1cd7   :  { %v844_v15 = vmul.f32 %v840_v47, %v808_v19 }
0x1cd9   :  { %v846_v54 = vpack.c.bf16 %v844_v15, %v844_v15 }
0x1cdb   :  { %851 = vrot.lane.b32.xlu1 %v846_v54, %s1973_s20 }
0x1cde   :  { %v850_v44 = vpop.permute.xlu0 %849 }
0x1cdf   :  { %856 = vst.msk [vmem:[#allocation3 + $0x38] sm:$0xf] %vm281_vm2, %v850_v44 }
0x1ce7   :  { %v1484_v13 = vpop.permute.xlu1 %1483 }
0x1ce8   :  { %v1488_v55 = vadd.f32 %v1484_v13, %v1468_v56 }
0x1cea   :  { %1956 = vtanh.f32 %v1488_v55 }
0x1cf0   :  { %v1957_v49 = vpop.eup %1956 }
0x1cf1   :  { %1495 = vrot.lane.b32.xlu2 %v1957_v49, %s1972_s17 }
0x1d43   :  { %v1494_v62 = vpop.permute.xlu1 %1493 }
0x1d44   :  { %v1499_v57 = vmul.f32 %v1494_v62, %v1463_v26 }
0x1d4b   :  { %v1496_v1 = vpop.permute.xlu2 %1495 }
0x1d4c   :  { %v1500_v12 = vmul.f32 %v1496_v1, %v1464_v45 }
0x1d4d   :  { %v852_v58 = vpop.permute.xlu1 %851 }
0x1d4e   :  { %v1501_v59 = vpack.c.bf16 %v1500_v12, %v1499_v57  ;;  %857 = vst.msk [vmem:[#allocation3 + $0x3c] sm:$0xf] %vm281_vm2, %v852_v58 }
0x1d50   :  { %1505 = vrot.lane.b32.xlu2 %v1501_v59, %s1973_s20 }
0x1d55   :  { %v1765_v60 = vld [vmem:[#allocation3 + $0x38] sm:$0xff] }
0x1d56   :  { %1722 = vmatmul.msk.bf16.gmra.mxu3 %vm209_vm1, %v1765_v60 }
0x1daa   :  { %v1506_v21 = vpop.permute.xlu2 %1505 }
0x1dab   :  { %1737 = vmatmul.msk.bf16.vlgmr.msrb.gmra.mxu2 %vm209_vm1, %v1506_v21 }
0x1dd9   :  { %v1002_v0 = vpop.f32.mrf.mxu3 }
0x1dda   :  { %v1003_v32 = vadd.f32 %v2249_v4, %v1002_v0 }
0x1de1   :  { %v1004_v63 = vpop.f32.mrf.mxu3 }
0x1de2   :  { %v1005_v23 = vadd.f32 %v2249_v4, %v1004_v63 }
0x1e2e   :  { %v1519_v34 = vpop.f32.mrf.mxu2 }
0x1e2f   :  { %v1520_v48 = vadd.f32 %v1519_v34, %v1003_v32 }
0x1e31   :  { %1958 = vtanh.f32 %v1520_v48  ;;  %v1524_v7 = vmul.f32 0.5, %v1520_v48 }
0x1e36   :  { %v1521_v61 = vpop.f32.mrf.mxu2 }
0x1e37   :  { %v1959_v25 = vpop.eup %1958  ;;  %v1522_v2 = vadd.f32 %v1521_v61, %v1005_v23 }
0x1e38   :  { %1538 = vrot.lane.b32.xlu0 %v1959_v25, %s1972_s17 }
0x1e39   :  { %1960 = vtanh.f32 %v1522_v2  ;;  %v1525_v8 = vmul.f32 0.5, %v1522_v2 }
0x1e3a   :  { %1962 = vtanh.f32 %v1524_v7 }
0x1e3b   :  { %1964 = vtanh.f32 %v1525_v8 }
0x1e3f   :  { %v1961_v6 = vpop.eup %1960 }
0x1e40   :  { %1540 = vrot.lane.b32.xlu1 %v1961_v6, %s1972_s17  ;;  %v1963_v42 = vpop.eup %1962 }
0x1e41   :  { %v1528_v9 = vmul.f32 0.5, %v1963_v42  ;;  %v1965_v14 = vpop.eup %1964 }
0x1e42   :  { %v1529_v4 = vmul.f32 0.5, %v1965_v14 }
0x1e43   :  { %v1530_v10 = vadd.f32 0.5, %v1528_v9 }
0x1e44   :  { %v1531_v18 = vadd.f32 0.5, %v1529_v4 }
0x1e45   :  { %v1534_v22 = vmul.f32 %v1530_v10, %v1487_v52 }
0x1e46   :  { %v1535_v5 = vmul.f32 %v1531_v18, %v1488_v55 }
0x1eaa   :  { %v1539_v16 = vpop.permute.xlu0 %1538 }
0x1eab   :  { %v1544_v17 = vmul.f32 %v1539_v16, %v1530_v10 }
0x1ead   :  { %1548 = vrot.lane.b32.xlu2 %v1544_v17, %s1972_s17 }
0x1eb2   :  { %v1541_v19 = vpop.permute.xlu1 %1540 }
0x1eb3   :  { %v1545_v20 = vmul.f32 %v1541_v19, %v1531_v18 }
0x1eb5   :  { %1550 = vrot.lane.b32.xlu0 %v1545_v20, %s1972_s17 }
0x1f07   :  { %v1549_v24 = vpop.permute.xlu2 %1548 }
0x1f08   :  { %v1554_v40 = vadd.f32 %v1549_v24, %v1534_v22 }
0x1f0a   :  { %1966 = vtanh.f32 %v1554_v40 }
0x1f10   :  { %v1967_v31 = vpop.eup %1966 }
0x1f11   :  { %1560 = vrot.lane.b32.xlu1 %v1967_v31, %s1972_s17 }
0x1f27   :  { %v1551_v43 = vpop.permute.xlu0 %1550 }
0x1f28   :  { %v1555_v26 = vadd.f32 %v1551_v43, %v1535_v5 }
0x1f2a   :  { %1968 = vtanh.f32 %v1555_v26 }
0x1f30   :  { %v1969_v27 = vpop.eup %1968 }
0x1f31   :  { %1562 = vrot.lane.b32.xlu2 %v1969_v27, %s1972_s17 }
0x1f83   :  { %v1561_v33 = vpop.permute.xlu1 %1560 }
0x1f84   :  { %v1566_v35 = vmul.f32 %v1561_v33, %v1530_v10 }
0x1f8b   :  { %v1563_v29 = vpop.permute.xlu2 %1562 }
0x1f8c   :  { %v1567_v36 = vmul.f32 %v1563_v29, %v1531_v18 }
0x1f8e   :  { %v1568_v37 = vpack.c.bf16 %v1567_v36, %v1566_v35 }
0x1f90   :  { %1578 = vrot.lane.b32.xlu0 %v1568_v37, %s1973_s20 }
0x2002   :  { %v1579_v3 = vpop.permute.xlu0 %1578 }
0x2003   :  { %1746 = vmatmul.msk.bf16.vlgmr.msrb.gmra.mxu1 %vm209_vm1, %v1579_v3 }
0x2080   :  { %v1604_v46 = vpop.f32.mrf.mxu1 }
0x2081   :  { %v1605_v11 = vadd.f32 %v1777_v38, %v1604_v46 }
0x2083   :  { %1610 = vst.msk [vmem:[%s2472_s9] sm:$0xff] %vm1609_vm3, %v1605_v11 }
0x2088   :  { %v1606_v45 = vpop.f32.mrf.mxu1 }
0x2089   :  { %v1607_v39 = vadd.f32 %v1777_v38, %v1606_v45 }
0x208b   :  { %1611 = vst.msk [vmem:[%s2472_s9 + $0x8] sm:$0xff] %vm1609_vm3, %v1607_v39 }

</bundles_post_ra>
